<compile_context>
chip_gen: v7x
topology: tpu7x:2x2x1
jax: 0.10.0
libtpu: 0.0.40
codegen_flags: <defaults>
</compile_context>

<pallas_src>
import functools

import jax
import jax.numpy as jnp
from jax.experimental import pallas as pl
from jax.experimental.pallas import tpu as pltpu


def _round_up(x: int, m: int) -> int:
    return (x + m - 1) // m * m


def _chip_info():
    """Best-effort chip detection: (vmem_capacity_bytes, lane_pad)."""
    kind = ""
    try:
        kind = (jax.devices()[0].device_kind or "").lower()
    except Exception:
        pass
    vmem_cap = None
    try:
        vmem_cap = int(pltpu.get_tpu_info().vmem_capacity_bytes)
    except Exception:
        vmem_cap = None
    if vmem_cap is None or vmem_cap <= 0:
        if "v7" in kind:
            vmem_cap = 64 << 20          # v7x: 64 MiB per TensorCore
        elif "v5" in kind or "v6" in kind:
            vmem_cap = 128 << 20         # v5e / v6e: 128 MiB
        else:
            vmem_cap = 64 << 20          # conservative default
    # v5e MXU is 128x128; v6e/v7x MXUs are 2x256x256 -> pad K/N to 256 there.
    lane_pad = 128 if "v5" in kind else 256
    return vmem_cap, lane_pad


def _pad_dim(d: int, lane_pad: int) -> int:
    p = _round_up(d, 128)
    if lane_pad > 128 and p > 128:
        p = _round_up(d, lane_pad)
    return p


def _vmem_bytes(TM, Dp, Hp, TN, want_logits, want_hidden, out_itemsize):
    """Conservative (double-buffered) VMEM estimate used only for tile sizing."""
    est = 2 * TM * Dp * 4                 # x tile (f32, double-buffered)
    est += 2 * TM * 128 * 4               # per-row valid column (lane padded)
    est += 2 * (Dp * Hp * 2 + 8 * Hp * 4)          # W1 (bf16) + b1 (f32)
    if want_logits:
        est += 2 * (Hp * TN * 2 + 8 * TN * 4)      # W2 N-tile + b2 N-tile
        est += 2 * TM * TN * out_itemsize          # logits tile
        est += TM * Hp * 2                         # hidden scratch (bf16)
    if want_hidden:
        est += 2 * TM * Hp * out_itemsize
    return est + (2 << 20)                # compiler scratch / margin


# ----------------------------------------------------------------------------
# Kernels
# ----------------------------------------------------------------------------
def _logits_kernel(tile_state_ref,         # scalar-prefetch: (num_m,) int32 SMEM
                   valid_ref,              # (TM, 1)  f32 per-row validity (1/0)
                   x_ref,                  # (TM, Dp) f32
                   w1_ref, b1_ref,         # (Dp, Hp) bf16, (1, Hp) f32
                   w2_ref, b2_ref,         # (Hp, TN) bf16, (1, TN) f32
                   *outs_and_scratch,      # logits (TM,TN)[, hidden (TM,Hp)], h_scr
                   want_hidden):
    if want_hidden:
        logits_ref, hidden_ref, h_scr = outs_and_scratch
    else:
        logits_ref, h_scr = outs_and_scratch
        hidden_ref = None

    i = pl.program_id(0)
    j = pl.program_id(1)
    state = tile_state_ref[i]              # 0 = empty, 1 = partial, 2 = full

    @pl.when(state == 0)
    def _():
        # No valid rows: skip both matmuls, just write zeros.
        logits_ref[...] = jnp.zeros_like(logits_ref)
        if want_hidden:
            @pl.when(j == 0)
            def _():
                hidden_ref[...] = jnp.zeros_like(hidden_ref)

    @pl.when(state > 0)
    def _():
        mask = valid_ref[...]                                        # (TM, 1) f32

        # Hidden activation computed once per M tile and cached for all N tiles.
        @pl.when(j == 0)
        def _():
            x = x_ref[...].astype(jnp.bfloat16)                      # VPU cast
            h = jnp.dot(x, w1_ref[...], preferred_element_type=jnp.float32)
            h = jnp.maximum(h + b1_ref[...], 0.0)
            h_scr[...] = h.astype(jnp.bfloat16)
            if want_hidden:
                @pl.when(state == 2)
                def _():
                    hidden_ref[...] = h.astype(hidden_ref.dtype)
                @pl.when(state == 1)
                def _():
                    hidden_ref[...] = (h * mask).astype(hidden_ref.dtype)

        logits = jnp.dot(h_scr[...], w2_ref[...],
                         preferred_element_type=jnp.float32) + b2_ref[...]

        @pl.when(state == 2)
        def _():
            logits_ref[...] = logits.astype(logits_ref.dtype)        # fast path

        @pl.when(state == 1)
        def _():
            logits_ref[...] = (logits * mask).astype(logits_ref.dtype)


def _hidden_kernel(tile_state_ref, valid_ref, x_ref, w1_ref, b1_ref, hidden_ref):
    i = pl.program_id(0)
    state = tile_state_ref[i]

    @pl.when(state == 0)
    def _():
        hidden_ref[...] = jnp.zeros_like(hidden_ref)

    @pl.when(state > 0)
    def _():
        x = x_ref[...].astype(jnp.bfloat16)
        h = jnp.dot(x, w1_ref[...], preferred_element_type=jnp.float32)
        h = jnp.maximum(h + b1_ref[...], 0.0)

        @pl.when(state == 2)
        def _():
            hidden_ref[...] = h.astype(hidden_ref.dtype)

        @pl.when(state == 1)
        def _():
            hidden_ref[...] = (h * valid_ref[...]).astype(hidden_ref.dtype)


# ----------------------------------------------------------------------------
# Wrapper
# ----------------------------------------------------------------------------
def cumbersome_forward(x, input_lengths=None, params=None, *, want_logits=True,
                       want_hidden=False, tile_m=None, tile_n=None,
                       out_dtype=jnp.float32):
    """Runs the Pallas kernel.

    Returns a dict with keys among {"logits": (B,T,V), "hidden": (B,T,H)},
    depending on the requested outputs.
    """
    assert want_logits or want_hidden
    w1, b1, w2, b2 = params
    B, T, D = x.shape
    H = w1.shape[1]
    V = w2.shape[1]
    M = B * T
    out_itemsize = jnp.dtype(out_dtype).itemsize

    if input_lengths is None:
        input_lengths = jnp.full((B,), T, dtype=jnp.int32)

    vmem_cap, lane_pad = _chip_info()
    budget = int(vmem_cap * 0.78)          # headroom below physical VMEM

    Dp = _pad_dim(D, lane_pad)
    Hp = _pad_dim(H, lane_pad)

    # ---- row (M) tiling ----------------------------------------------------
    if tile_m is None:
        TM = min(512, _round_up(M, 16))
        # Keep >=2 parallel M tiles for the two v7x TensorCores when M allows.
        if M > 16 and M <= TM:
            TM = _round_up(pl.cdiv(M, 2), 16)
    else:
        TM = min(_round_up(tile_m, 16), _round_up(M, 16))

    # ---- vocab (N) tiling --------------------------------------------------
    if want_logits:
        Vl = _pad_dim(V, lane_pad)
        TN_CAP = 2048
        if tile_n is not None:
            TN = min(_round_up(tile_n, 128), Vl)
        elif Vl <= TN_CAP:
            TN = Vl
        else:
            n0 = pl.cdiv(Vl, TN_CAP)
            TN = _round_up(pl.cdiv(Vl, n0), lane_pad)
    else:
        Vl, TN = 0, 0

    # ---- shrink tiles until the conservative estimate fits the VMEM budget --
    while (_vmem_bytes(TM, Dp, Hp, TN, want_logits, want_hidden, out_itemsize)
           > budget and TM > 64):
        TM = max(64, _round_up(TM // 2, 16))
    while (want_logits
           and _vmem_bytes(TM, Dp, Hp, TN, want_logits, want_hidden, out_itemsize)
           > budget and TN > 128):
        TN = max(128, _round_up(TN // 2, 128))

    M_pad = _round_up(M, TM)
    num_m = M_pad // TM
    if want_logits:
        Vp = _round_up(Vl, TN)
        num_n = Vp // TN
    else:
        Vp, num_n = 0, 1

    # --- wrapper-side layout plumbing (cheap XLA ops, not the hot loop) -----
    # x stays f32 (kernel casts to bf16 on the VPU); padding contributes zeros.
    x2 = jnp.pad(x.reshape(M, D).astype(jnp.float32),
                 ((0, M_pad - M), (0, Dp - D)))
    w1p = jnp.pad(w1.astype(jnp.bfloat16), ((0, Dp - D), (0, Hp - H)))
    b1p = jnp.pad(jnp.asarray(b1, jnp.float32).reshape(1, H),
                  ((0, 0), (0, Hp - H)))
    if want_logits:
        w2p = jnp.pad(w2.astype(jnp.bfloat16), ((0, Hp - H), (0, Vp - V)))
        b2p = jnp.pad(jnp.asarray(b2, jnp.float32).reshape(1, V),
                      ((0, 0), (0, Vp - V)))

    # Per-row validity and per-tile state, computed once in the wrapper.
    t_ids = jnp.arange(T, dtype=jnp.int32)[None, :]
    row_valid = (t_ids < input_lengths.astype(jnp.int32)[:, None]).reshape(M)
    row_valid = jnp.pad(row_valid, (0, M_pad - M))        # pads False
    n_valid = row_valid.reshape(num_m, TM).sum(axis=1)
    tile_state = jnp.where(n_valid == 0, 0,
                           jnp.where(n_valid == TM, 2, 1)).astype(jnp.int32)
    valid_col = row_valid.astype(jnp.float32).reshape(M_pad, 1)

    # Cost hint for XLA's scheduler around the custom call.
    flops = 2 * M_pad * Dp * Hp
    bytes_accessed = M_pad * Dp * 4 + Dp * Hp * 2 + Hp * 4 + M_pad * 4
    if want_logits:
        flops += 2 * M_pad * Hp * Vp
        bytes_accessed += Hp * Vp * 2 + Vp * 4 + M_pad * Vp * out_itemsize
    if want_hidden:
        bytes_accessed += M_pad * Hp * out_itemsize
    cost = pl.CostEstimate(flops=int(flops), transcendentals=0,
                           bytes_accessed=int(bytes_accessed))

    if want_logits:
        def _run(single_buffer_weights):
            inv = (dict(pipeline_mode=pl.Buffered(1))
                   if single_buffer_weights else {})
            # W2/b2 change with the inner N axis unless there is one N tile,
            # so only single-buffer them when truly grid-invariant.
            w2_inv = inv if num_n == 1 else {}
            in_specs = [
                pl.BlockSpec((TM, 1), lambda i, j, ts: (i, 0)),     # validity
                pl.BlockSpec((TM, Dp), lambda i, j, ts: (i, 0)),    # x tile
                pl.BlockSpec((Dp, Hp), lambda i, j, ts: (0, 0), **inv),     # W1
                pl.BlockSpec((1, Hp), lambda i, j, ts: (0, 0), **inv),      # b1
                pl.BlockSpec((Hp, TN), lambda i, j, ts: (0, j), **w2_inv),  # W2
                pl.BlockSpec((1, TN), lambda i, j, ts: (0, j), **w2_inv),   # b2
            ]
            out_shapes = [jax.ShapeDtypeStruct((M_pad, Vp), out_dtype)]
            out_specs = [pl.BlockSpec((TM, TN), lambda i, j, ts: (i, j))]
            if want_hidden:
                out_shapes.append(jax.ShapeDtypeStruct((M_pad, Hp), out_dtype))
                out_specs.append(pl.BlockSpec((TM, Hp), lambda i, j, ts: (i, 0)))
            kernel = functools.partial(_logits_kernel, want_hidden=want_hidden)
            return pl.pallas_call(
                kernel,
                out_shape=tuple(out_shapes),
                grid_spec=pltpu.PrefetchScalarGridSpec(
                    num_scalar_prefetch=1,              # tile_state -> SMEM
                    grid=(num_m, num_n),
                    in_specs=in_specs,
                    out_specs=out_specs,
                    scratch_shapes=[pltpu.VMEM((TM, Hp), jnp.bfloat16)]),
                compiler_params=pltpu.CompilerParams(
                    # N axis must stay "arbitrary": the hidden scratch written
                    # at j == 0 is reused by j > 0 on the same core.
                    dimension_semantics=("parallel", "arbitrary"),
                    vmem_limit_bytes=int(budget)),
                cost_estimate=cost,
            )(tile_state, valid_col, x2, w1p, b1p, w2p, b2p)

        try:
            outs = _run(True)
        except Exception:
            outs = _run(False)          # fallback: default double-buffering
    else:
        def _run(single_buffer_weights):
            inv = (dict(pipeline_mode=pl.Buffered(1))
                   if single_buffer_weights else {})
            in_specs = [
                pl.BlockSpec((TM, 1), lambda i, ts: (i, 0)),
                pl.BlockSpec((TM, Dp), lambda i, ts: (i, 0)),
                pl.BlockSpec((Dp, Hp), lambda i, ts: (0, 0), **inv),
                pl.BlockSpec((1, Hp), lambda i, ts: (0, 0), **inv),
            ]
            return pl.pallas_call(
                _hidden_kernel,
                out_shape=jax.ShapeDtypeStruct((M_pad, Hp), out_dtype),
                grid_spec=pltpu.PrefetchScalarGridSpec(
                    num_scalar_prefetch=1,
                    grid=(num_m,),
                    in_specs=in_specs,
                    out_specs=pl.BlockSpec((TM, Hp), lambda i, ts: (i, 0))),
                compiler_params=pltpu.CompilerParams(
                    dimension_semantics=("parallel",),
                    vmem_limit_bytes=int(budget)),
                cost_estimate=cost,
            )(tile_state, valid_col, x2, w1p, b1p)

        try:
            out_hidden = _run(True)
        except Exception:
            out_hidden = _run(False)
        outs = (out_hidden,)

    result = {}
    idx = 0
    if want_logits:
        result["logits"] = outs[idx][:M, :V].reshape(B, T, V)
        idx += 1
    if want_hidden:
        result["hidden"] = outs[idx][:M, :H].reshape(B, T, H)
    return result


def forward(x, input_lengths=None, params=None):
    return cumbersome_forward(x, input_lengths, params,
                              want_logits=True, want_hidden=False)["logits"]


def extract_logits(x, input_lengths=None, params=None):
    return cumbersome_forward(x, input_lengths, params,
                              want_logits=True, want_hidden=False)["logits"]


def extract_intermediate(x, input_lengths=None, params=None):
    # Hidden only: the second matmul and the logits writeback are skipped.
    return cumbersome_forward(x, input_lengths, params,
                              want_logits=False, want_hidden=True)["hidden"]


if __name__ == "__main__":
    # Small shapes consistent with a (batch, seq, feature) speech-style input.
    # lengths [T, T, T//2, 0] with tile_m=16 -> full / full / partial / empty
    # M tiles; V=160 with tile_n=128 -> two N tiles (exercises the scratch
    # reuse across the N axis).
    B, T, D, H, V = 4, 16, 32, 64, 160

    key = jax.random.PRNGKey(0)
    k_x, k_w1, k_w2 = jax.random.split(key, 3)

    x = jax.random.normal(k_x, (B, T, D), dtype=jnp.float32)
    input_lengths = jnp.array([T, T, T // 2, 0], dtype=jnp.int32)

    # Deterministic parameter init (synthetic weights, no checkpoint load).
    w1 = jax.random.normal(k_w1, (D, H), dtype=jnp.float32) * 0.1
    b1 = jnp.zeros((1, H), dtype=jnp.float32)
    w2 = jax.random.normal(k_w2, (H, V), dtype=jnp.float32) * 0.1
    b2 = jnp.zeros((1, V), dtype=jnp.float32)
    params = (w1, b1, w2, b2)

    logits = cumbersome_forward(x, input_lengths, params, want_logits=True,
                                want_hidden=False, tile_m=16, tile_n=128)["logits"]
    hidden = extract_intermediate(x, input_lengths, params)
    jax.block_until_ready((logits, hidden))

    # Plain-JAX reference mirroring the kernel's bf16-operand / f32-accumulate math.
    xb = x.astype(jnp.bfloat16).astype(jnp.float32)
    w1b = w1.astype(jnp.bfloat16).astype(jnp.float32)
    w2b = w2.astype(jnp.bfloat16).astype(jnp.float32)
    h_ref = jnp.maximum(jnp.einsum("btd,dh->bth", xb, w1b) + b1[0], 0.0)
    l_ref = jnp.einsum("bth,hv->btv",
                       h_ref.astype(jnp.bfloat16).astype(jnp.float32), w2b) + b2[0]
    t_mask = (jnp.arange(T)[None, :, None] < input_lengths[:, None, None])
    h_ref = jnp.where(t_mask, h_ref, 0.0)
    l_ref = jnp.where(t_mask, l_ref, 0.0)

    assert logits.shape == (B, T, V) and hidden.shape == (B, T, H)
    assert jnp.allclose(logits, l_ref, atol=1e-2, rtol=1e-2)
    assert jnp.allclose(hidden, h_ref, atol=1e-2, rtol=1e-2)

    # Also check the default (auto tile) path used by forward().
    logits_auto = forward(x, input_lengths, params)
    jax.block_until_ready(logits_auto)
    assert jnp.allclose(logits_auto, l_ref, atol=1e-2, rtol=1e-2)

    print("KERNEL_OK")
</pallas_src>

<mosaic_0001>
module attributes {stable_mosaic.version = 11 : i64} {
  func.func @_logits_kernel(%arg0: i32, %arg1: i32, %arg2: memref<4xi32, #tpu.memory_space<smem>>, %arg3: memref<16x1xf32, #tpu.memory_space<vmem>>, %arg4: memref<16x128xf32, #tpu.memory_space<vmem>>, %arg5: memref<128x128xbf16, #tpu.memory_space<vmem>>, %arg6: memref<1x128xf32, #tpu.memory_space<vmem>>, %arg7: memref<128x128xbf16, #tpu.memory_space<vmem>>, %arg8: memref<1x128xf32, #tpu.memory_space<vmem>>, %arg9: memref<16x128xf32, #tpu.memory_space<vmem>>, %arg10: memref<16x128xbf16, #tpu.memory_space<vmem>>) attributes {dimension_semantics = [#tpu.dimension_semantics<parallel>, #tpu.dimension_semantics<arbitrary>], iteration_bounds = array<i64: 4, 2>, scalar_prefetch = 1 : i64, scratch_operands = 1 : i64, tpu.core_type = #tpu.core_type<tc>, window_params = [{transform_indices = @transform_0, window_bounds = array<i64: 16, 1>}, {transform_indices = @transform_1, window_bounds = array<i64: 16, 128>}, {pipeline_mode = #tpu.pipeline_mode<synchronous>, transform_indices = @transform_2, window_bounds = array<i64: 128, 128>}, {pipeline_mode = #tpu.pipeline_mode<synchronous>, transform_indices = @transform_3, window_bounds = array<i64: 1, 128>}, {transform_indices = @transform_4, window_bounds = array<i64: 128, 128>}, {transform_indices = @transform_5, window_bounds = array<i64: 1, 128>}, {transform_indices = @transform_6, window_bounds = array<i64: 16, 128>}]} {
    %0 = arith.index_cast %arg0 : i32 to index
    %1 = memref.load %arg2[%0] : memref<4xi32, #tpu.memory_space<smem>>
    %c0_i32 = arith.constant 0 : i32
    %2 = arith.cmpi eq, %1, %c0_i32 : i32
    %3 = arith.extui %2 : i1 to i32
    %c0_i32_0 = arith.constant 0 : i32
    %4 = arith.cmpi ne, %3, %c0_i32_0 : i32
    scf.if %4 {
      %cst = arith.constant 0.000000e+00 : f32
      %8 = vector.broadcast %cst : f32 to vector<16x128xf32>
      %c0 = arith.constant 0 : index
      %c0_3 = arith.constant 0 : index
      %9 = vector.load %arg9[%c0, %c0_3] : memref<16x128xf32, #tpu.memory_space<vmem>>, vector<16x128xf32>
      tpu.vector_store %arg9[%c0, %c0_3], %8 {strides = array<i32>} : memref<16x128xf32, #tpu.memory_space<vmem>>, vector<16x128xf32>,
    } else {
    }
    %c0_i32_1 = arith.constant 0 : i32
    %5 = arith.cmpi sgt, %1, %c0_i32_1 : i32
    %6 = arith.extui %5 : i1 to i32
    %c0_i32_2 = arith.constant 0 : i32
    %7 = arith.cmpi ne, %6, %c0_i32_2 : i32
    scf.if %7 {
      %c0 = arith.constant 0 : index
      %c0_3 = arith.constant 0 : index
      %8 = vector.load %arg3[%c0, %c0_3] : memref<16x1xf32, #tpu.memory_space<vmem>>, vector<16x1xf32>
      %c0_i32_4 = arith.constant 0 : i32
      %9 = arith.cmpi eq, %arg1, %c0_i32_4 : i32
      %10 = arith.extui %9 : i1 to i32
      %c0_i32_5 = arith.constant 0 : i32
      %11 = arith.cmpi ne, %10, %c0_i32_5 : i32
      scf.if %11 {
        %c0_14 = arith.constant 0 : index
        %c0_15 = arith.constant 0 : index
        %24 = vector.load %arg4[%c0_14, %c0_15] : memref<16x128xf32, #tpu.memory_space<vmem>>, vector<16x128xf32>
        %25 = arith.truncf %24 : vector<16x128xf32> to vector<16x128xbf16>
        %c0_16 = arith.constant 0 : index
        %c0_17 = arith.constant 0 : index
        %26 = vector.load %arg5[%c0_16, %c0_17] : memref<128x128xbf16, #tpu.memory_space<vmem>>, vector<128x128xbf16>
        %cst_18 = arith.constant dense<0.000000e+00> : vector<16x128xf32>
        %27 = tpu.matmul %25, %26, %cst_18 {dimension_numbers = #tpu.dot_dimension_numbers<[1], [0], [0], [1], [0, 0, 1, 1], [], []>} : vector<16x128xbf16>, vector<128x128xbf16>, vector<16x128xf32> -> vector<16x128xf32>
        %c0_19 = arith.constant 0 : index
        %c0_20 = arith.constant 0 : index
        %28 = vector.load %arg6[%c0_19, %c0_20] : memref<1x128xf32, #tpu.memory_space<vmem>>, vector<1x128xf32>
        %29 = vector.broadcast %28 : vector<1x128xf32> to vector<16x128xf32>
        %30 = arith.addf %27, %29 : vector<16x128xf32>
        %cst_21 = arith.constant 0.000000e+00 : f32
        %31 = vector.broadcast %cst_21 : f32 to vector<16x128xf32>
        %32 = arith.maximumf %30, %31 : vector<16x128xf32>
        %33 = arith.truncf %32 : vector<16x128xf32> to vector<16x128xbf16>
        %c0_22 = arith.constant 0 : index
        %c0_23 = arith.constant 0 : index
        %34 = vector.load %arg10[%c0_22, %c0_23] : memref<16x128xbf16, #tpu.memory_space<vmem>>, vector<16x128xbf16>
        tpu.vector_store %arg10[%c0_22, %c0_23], %33 {strides = array<i32>} : memref<16x128xbf16, #tpu.memory_space<vmem>>, vector<16x128xbf16>,
      } else {
      }
      %c0_6 = arith.constant 0 : index
      %c0_7 = arith.constant 0 : index
      %12 = vector.load %arg10[%c0_6, %c0_7] : memref<16x128xbf16, #tpu.memory_space<vmem>>, vector<16x128xbf16>
      %c0_8 = arith.constant 0 : index
      %c0_9 = arith.constant 0 : index
      %13 = vector.load %arg7[%c0_8, %c0_9] : memref<128x128xbf16, #tpu.memory_space<vmem>>, vector<128x128xbf16>
      %cst = arith.constant dense<0.000000e+00> : vector<16x128xf32>
      %14 = tpu.matmul %12, %13, %cst {dimension_numbers = #tpu.dot_dimension_numbers<[1], [0], [0], [1], [0, 0, 1, 1], [], []>} : vector<16x128xbf16>, vector<128x128xbf16>, vector<16x128xf32> -> vector<16x128xf32>
      %c0_10 = arith.constant 0 : index
      %c0_11 = arith.constant 0 : index
      %15 = vector.load %arg8[%c0_10, %c0_11] : memref<1x128xf32, #tpu.memory_space<vmem>>, vector<1x128xf32>
      %16 = vector.broadcast %15 : vector<1x128xf32> to vector<16x128xf32>
      %17 = arith.addf %14, %16 : vector<16x128xf32>
      %c2_i32 = arith.constant 2 : i32
      %18 = arith.cmpi eq, %1, %c2_i32 : i32
      %19 = arith.extui %18 : i1 to i32
      %c0_i32_12 = arith.constant 0 : i32
      %20 = arith.cmpi ne, %19, %c0_i32_12 : i32
      scf.if %20 {
        %c0_14 = arith.constant 0 : index
        %c0_15 = arith.constant 0 : index
        %24 = vector.load %arg9[%c0_14, %c0_15] : memref<16x128xf32, #tpu.memory_space<vmem>>, vector<16x128xf32>
        tpu.vector_store %arg9[%c0_14, %c0_15], %17 {strides = array<i32>} : memref<16x128xf32, #tpu.memory_space<vmem>>, vector<16x128xf32>,
      } else {
      }
      %c1_i32 = arith.constant 1 : i32
      %21 = arith.cmpi eq, %1, %c1_i32 : i32
      %22 = arith.extui %21 : i1 to i32
      %c0_i32_13 = arith.constant 0 : i32
      %23 = arith.cmpi ne, %22, %c0_i32_13 : i32
      scf.if %23 {
        %24 = vector.broadcast %8 : vector<16x1xf32> to vector<16x128xf32>
        %25 = arith.mulf %17, %24 : vector<16x128xf32>
        %c0_14 = arith.constant 0 : index
        %c0_15 = arith.constant 0 : index
        %26 = vector.load %arg9[%c0_14, %c0_15] : memref<16x128xf32, #tpu.memory_space<vmem>>, vector<16x128xf32>
        tpu.vector_store %arg9[%c0_14, %c0_15], %25 {strides = array<i32>} : memref<16x128xf32, #tpu.memory_space<vmem>>, vector<16x128xf32>,
      } else {
      }
    } else {
    }
    return
  }
  func.func @transform_0(%arg0: i32, %arg1: i32, %arg2: memref<4xi32, #tpu.memory_space<smem>>) -> (i32, i32) {
    %c0_i32 = arith.constant 0 : i32
    %c0_i32_0 = arith.constant 0 : i32
    return %arg0, %c0_i32 : i32, i32
  }
  func.func @transform_1(%arg0: i32, %arg1: i32, %arg2: memref<4xi32, #tpu.memory_space<smem>>) -> (i32, i32) {
    %c0_i32 = arith.constant 0 : i32
    %c0_i32_0 = arith.constant 0 : i32
    return %arg0, %c0_i32 : i32, i32
  }
  func.func @transform_2(%arg0: i32, %arg1: i32, %arg2: memref<4xi32, #tpu.memory_space<smem>>) -> (i32, i32) {
    %c0_i32 = arith.constant 0 : i32
    %c0_i32_0 = arith.constant 0 : i32
    %c0_i32_1 = arith.constant 0 : i32
    return %c0_i32, %c0_i32_0 : i32, i32
  }
  func.func @transform_3(%arg0: i32, %arg1: i32, %arg2: memref<4xi32, #tpu.memory_space<smem>>) -> (i32, i32) {
    %c0_i32 = arith.constant 0 : i32
    %c0_i32_0 = arith.constant 0 : i32
    %c0_i32_1 = arith.constant 0 : i32
    return %c0_i32, %c0_i32_0 : i32, i32
  }
  func.func @transform_4(%arg0: i32, %arg1: i32, %arg2: memref<4xi32, #tpu.memory_space<smem>>) -> (i32, i32) {
    %c0_i32 = arith.constant 0 : i32
    %c0_i32_0 = arith.constant 0 : i32
    return %c0_i32, %arg1 : i32, i32
  }
  func.func @transform_5(%arg0: i32, %arg1: i32, %arg2: memref<4xi32, #tpu.memory_space<smem>>) -> (i32, i32) {
    %c0_i32 = arith.constant 0 : i32
    %c0_i32_0 = arith.constant 0 : i32
    return %c0_i32, %arg1 : i32, i32
  }
  func.func @transform_6(%arg0: i32, %arg1: i32, %arg2: memref<4xi32, #tpu.memory_space<smem>>) -> (i32, i32) {
    %c0_i32 = arith.constant 0 : i32
    return %arg0, %arg1 : i32, i32
  }
}

module attributes {stable_mosaic.version = 11 : i64} {
  func.func @_logits_kernel(%arg0: i32, %arg1: i32, %arg2: memref<4xi32, #tpu.memory_space<smem>>, %arg3: memref<16x1xf32, #tpu.memory_space<vmem>>, %arg4: memref<16x128xf32, #tpu.memory_space<vmem>>, %arg5: memref<128x128xbf16, #tpu.memory_space<vmem>>, %arg6: memref<1x128xf32, #tpu.memory_space<vmem>>, %arg7: memref<128x128xbf16, #tpu.memory_space<vmem>>, %arg8: memref<1x128xf32, #tpu.memory_space<vmem>>, %arg9: memref<16x128xf32, #tpu.memory_space<vmem>>, %arg10: memref<16x128xbf16, #tpu.memory_space<vmem>>) attributes {dimension_semantics = [#tpu.dimension_semantics<parallel>, #tpu.dimension_semantics<arbitrary>], iteration_bounds = array<i64: 4, 2>, scalar_prefetch = 1 : i64, scratch_operands = 1 : i64, tpu.core_type = #tpu.core_type<tc>, window_params = [{transform_indices = @transform_0, window_bounds = array<i64: 16, 1>}, {transform_indices = @transform_1, window_bounds = array<i64: 16, 128>}, {pipeline_mode = #tpu.pipeline_mode<synchronous>, transform_indices = @transform_2, window_bounds = array<i64: 128, 128>}, {pipeline_mode = #tpu.pipeline_mode<synchronous>, transform_indices = @transform_3, window_bounds = array<i64: 1, 128>}, {transform_indices = @transform_4, window_bounds = array<i64: 128, 128>}, {transform_indices = @transform_5, window_bounds = array<i64: 1, 128>}, {transform_indices = @transform_6, window_bounds = array<i64: 16, 128>}]} {
    %0 = arith.index_cast %arg0 : i32 to index
    %1 = memref.load %arg2[%0] : memref<4xi32, #tpu.memory_space<smem>>
    %c0_i32 = arith.constant 0 : i32
    %2 = arith.cmpi eq, %1, %c0_i32 : i32
    %3 = arith.extui %2 : i1 to i32
    %c0_i32_0 = arith.constant 0 : i32
    %4 = arith.cmpi ne, %3, %c0_i32_0 : i32
    scf.if %4 {
      %cst = arith.constant 0.000000e+00 : f32
      %8 = vector.broadcast %cst : f32 to vector<16x128xf32>
      %c0 = arith.constant 0 : index
      %c0_3 = arith.constant 0 : index
      %9 = vector.load %arg9[%c0, %c0_3] : memref<16x128xf32, #tpu.memory_space<vmem>>, vector<16x128xf32>
      tpu.vector_store %arg9[%c0, %c0_3], %8 {strides = array<i32>} : memref<16x128xf32, #tpu.memory_space<vmem>>, vector<16x128xf32>,
    } else {
    }
    %c0_i32_1 = arith.constant 0 : i32
    %5 = arith.cmpi sgt, %1, %c0_i32_1 : i32
    %6 = arith.extui %5 : i1 to i32
    %c0_i32_2 = arith.constant 0 : i32
    %7 = arith.cmpi ne, %6, %c0_i32_2 : i32
    scf.if %7 {
      %c0 = arith.constant 0 : index
      %c0_3 = arith.constant 0 : index
      %8 = vector.load %arg3[%c0, %c0_3] : memref<16x1xf32, #tpu.memory_space<vmem>>, vector<16x1xf32>
      %c0_i32_4 = arith.constant 0 : i32
      %9 = arith.cmpi eq, %arg1, %c0_i32_4 : i32
      %10 = arith.extui %9 : i1 to i32
      %c0_i32_5 = arith.constant 0 : i32
      %11 = arith.cmpi ne, %10, %c0_i32_5 : i32
      scf.if %11 {
        %c0_14 = arith.constant 0 : index
        %c0_15 = arith.constant 0 : index
        %24 = vector.load %arg4[%c0_14, %c0_15] : memref<16x128xf32, #tpu.memory_space<vmem>>, vector<16x128xf32>
        %25 = arith.truncf %24 : vector<16x128xf32> to vector<16x128xbf16>
        %c0_16 = arith.constant 0 : index
        %c0_17 = arith.constant 0 : index
        %26 = vector.load %arg5[%c0_16, %c0_17] : memref<128x128xbf16, #tpu.memory_space<vmem>>, vector<128x128xbf16>
        %cst_18 = arith.constant dense<0.000000e+00> : vector<16x128xf32>
        %27 = tpu.matmul %25, %26, %cst_18 {dimension_numbers = #tpu.dot_dimension_numbers<[1], [0], [0], [1], [0, 0, 1, 1], [], []>} : vector<16x128xbf16>, vector<128x128xbf16>, vector<16x128xf32> -> vector<16x128xf32>
        %c0_19 = arith.constant 0 : index
        %c0_20 = arith.constant 0 : index
        %28 = vector.load %arg6[%c0_19, %c0_20] : memref<1x128xf32, #tpu.memory_space<vmem>>, vector<1x128xf32>
        %29 = vector.broadcast %28 : vector<1x128xf32> to vector<16x128xf32>
        %30 = arith.addf %27, %29 : vector<16x128xf32>
        %cst_21 = arith.constant 0.000000e+00 : f32
        %31 = vector.broadcast %cst_21 : f32 to vector<16x128xf32>
        %32 = arith.maximumf %30, %31 : vector<16x128xf32>
        %33 = arith.truncf %32 : vector<16x128xf32> to vector<16x128xbf16>
        %c0_22 = arith.constant 0 : index
        %c0_23 = arith.constant 0 : index
        %34 = vector.load %arg10[%c0_22, %c0_23] : memref<16x128xbf16, #tpu.memory_space<vmem>>, vector<16x128xbf16>
        tpu.vector_store %arg10[%c0_22, %c0_23], %33 {strides = array<i32>} : memref<16x128xbf16, #tpu.memory_space<vmem>>, vector<16x128xbf16>,
      } else {
      }
      %c0_6 = arith.constant 0 : index
      %c0_7 = arith.constant 0 : index
      %12 = vector.load %arg10[%c0_6, %c0_7] : memref<16x128xbf16, #tpu.memory_space<vmem>>, vector<16x128xbf16>
      %c0_8 = arith.constant 0 : index
      %c0_9 = arith.constant 0 : index
      %13 = vector.load %arg7[%c0_8, %c0_9] : memref<128x128xbf16, #tpu.memory_space<vmem>>, vector<128x128xbf16>
      %cst = arith.constant dense<0.000000e+00> : vector<16x128xf32>
      %14 = tpu.matmul %12, %13, %cst {dimension_numbers = #tpu.dot_dimension_numbers<[1], [0], [0], [1], [0, 0, 1, 1], [], []>} : vector<16x128xbf16>, vector<128x128xbf16>, vector<16x128xf32> -> vector<16x128xf32>
      %c0_10 = arith.constant 0 : index
      %c0_11 = arith.constant 0 : index
      %15 = vector.load %arg8[%c0_10, %c0_11] : memref<1x128xf32, #tpu.memory_space<vmem>>, vector<1x128xf32>
      %16 = vector.broadcast %15 : vector<1x128xf32> to vector<16x128xf32>
      %17 = arith.addf %14, %16 : vector<16x128xf32>
      %c2_i32 = arith.constant 2 : i32
      %18 = arith.cmpi eq, %1, %c2_i32 : i32
      %19 = arith.extui %18 : i1 to i32
      %c0_i32_12 = arith.constant 0 : i32
      %20 = arith.cmpi ne, %19, %c0_i32_12 : i32
      scf.if %20 {
        %c0_14 = arith.constant 0 : index
        %c0_15 = arith.constant 0 : index
        %24 = vector.load %arg9[%c0_14, %c0_15] : memref<16x128xf32, #tpu.memory_space<vmem>>, vector<16x128xf32>
        tpu.vector_store %arg9[%c0_14, %c0_15], %17 {strides = array<i32>} : memref<16x128xf32, #tpu.memory_space<vmem>>, vector<16x128xf32>,
      } else {
      }
      %c1_i32 = arith.constant 1 : i32
      %21 = arith.cmpi eq, %1, %c1_i32 : i32
      %22 = arith.extui %21 : i1 to i32
      %c0_i32_13 = arith.constant 0 : i32
      %23 = arith.cmpi ne, %22, %c0_i32_13 : i32
      scf.if %23 {
        %24 = vector.broadcast %8 : vector<16x1xf32> to vector<16x128xf32>
        %25 = arith.mulf %17, %24 : vector<16x128xf32>
        %c0_14 = arith.constant 0 : index
        %c0_15 = arith.constant 0 : index
        %26 = vector.load %arg9[%c0_14, %c0_15] : memref<16x128xf32, #tpu.memory_space<vmem>>, vector<16x128xf32>
        tpu.vector_store %arg9[%c0_14, %c0_15], %25 {strides = array<i32>} : memref<16x128xf32, #tpu.memory_space<vmem>>, vector<16x128xf32>,
      } else {
      }
    } else {
    }
    return
  }
  func.func @transform_0(%arg0: i32, %arg1: i32, %arg2: memref<4xi32, #tpu.memory_space<smem>>) -> (i32, i32) {
    %c0_i32 = arith.constant 0 : i32
    %c0_i32_0 = arith.constant 0 : i32
    return %arg0, %c0_i32 : i32, i32
  }
  func.func @transform_1(%arg0: i32, %arg1: i32, %arg2: memref<4xi32, #tpu.memory_space<smem>>) -> (i32, i32) {
    %c0_i32 = arith.constant 0 : i32
    %c0_i32_0 = arith.constant 0 : i32
    return %arg0, %c0_i32 : i32, i32
  }
  func.func @transform_2(%arg0: i32, %arg1: i32, %arg2: memref<4xi32, #tpu.memory_space<smem>>) -> (i32, i32) {
    %c0_i32 = arith.constant 0 : i32
    %c0_i32_0 = arith.constant 0 : i32
    %c0_i32_1 = arith.constant 0 : i32
    return %c0_i32, %c0_i32_0 : i32, i32
  }
  func.func @transform_3(%arg0: i32, %arg1: i32, %arg2: memref<4xi32, #tpu.memory_space<smem>>) -> (i32, i32) {
    %c0_i32 = arith.constant 0 : i32
    %c0_i32_0 = arith.constant 0 : i32
    %c0_i32_1 = arith.constant 0 : i32
    return %c0_i32, %c0_i32_0 : i32, i32
  }
  func.func @transform_4(%arg0: i32, %arg1: i32, %arg2: memref<4xi32, #tpu.memory_space<smem>>) -> (i32, i32) {
    %c0_i32 = arith.constant 0 : i32
    %c0_i32_0 = arith.constant 0 : i32
    return %c0_i32, %arg1 : i32, i32
  }
  func.func @transform_5(%arg0: i32, %arg1: i32, %arg2: memref<4xi32, #tpu.memory_space<smem>>) -> (i32, i32) {
    %c0_i32 = arith.constant 0 : i32
    %c0_i32_0 = arith.constant 0 : i32
    return %c0_i32, %arg1 : i32, i32
  }
  func.func @transform_6(%arg0: i32, %arg1: i32, %arg2: memref<4xi32, #tpu.memory_space<smem>>) -> (i32, i32) {
    %c0_i32 = arith.constant 0 : i32
    return %arg0, %arg1 : i32, i32
  }
}

</mosaic_0001>

<bundles_post_ra>
// kernel: tpu_custom_call.1
= control target key start
LH: loop header
LB: loop body
LE: loop exit
PB: predicated region body
PF: predicated region fallthrough
CT: control target
= control target key end

     0   :  { %s1628_s0 = inlined_call_operand.vmem [shape: s32[4], index: 0, kind: input, shape index: {}]   ;;  %s1629_s1 = inlined_call_operand.vmem [shape: f32[64,1], index: 1, kind: input, shape index: {}]   ;;  %s1630_s2 = inlined_call_operand.vmem [shape: f32[64,128], index: 2, kind: input, shape index: {}]   ;;  %s1631_s3 = inlined_call_operand.hbm [shape: bf16[128,128], index: 3, kind: input, shape index: {}]   ;;  %s1632_s4 = inlined_call_operand.vmem [shape: f32[1,128], index: 4, kind: input, shape index: {}]   ;;  %s1633_s5 = inlined_call_operand.hbm [shape: bf16[128,256], index: 5, kind: input, shape index: {}]   ;;  %s1634_s6 = inlined_call_operand.vmem [shape: f32[1,256], index: 6, kind: input, shape index: {}]   ;;  %s1635_s7 = inlined_call_operand.hbm [shape: f32[64,256], index: 7, kind: output, shape index: {}]  }
   0x1   :  { %1653 = sst [smem:[#allocation20_spill]] %s1631_s3  ;;  %s12_s26 = sshll.u32 %s1628_s0, 4  ;;  %s13_s26 = int_to_ptr.vmem [resolvable:$true] %s12_s26 }
   0x2   :  { %1654 = sst [smem:[#allocation21_spill]] %s1633_s5  ;;  %s1031_s27 = scalar_lea.vmem %s13_s26, 16 }
   0x3   :  { %1655 = sst [smem:[#allocation22_spill]] %s1635_s7  ;;  %p1032_p0 = scmp.ne.s32.totalorder %s13_s26, %s1031_s27 }
   0x4   :  { %p1036_p1 = scmp.lt.s32.totalorder %s13_s26, %s13_s26  ;;  %p1037_p2 = scmp.lt.s32.totalorder %s1031_s27, %s1031_s27 }
   0x6   :  { %p1038_p3 = por %p1037_p2, %p1036_p1 }
   0x8   :  { %p1039_p4 = pnand %p1038_p3, %p1032_p0 }
   0xa   :  { %1042 = shalt.err (!%p1039_p4)  }
   0xb   :  { %s1231_s28 = smov [#allocation4]  }
   0xc   :  { %15 = dma.vmem_to_smem %s13_s26, 16, %s1231_s28, [#allocation3] }
   0xd   :  { %1173 = dma.done.wait [#allocation3], 16 }
   0xe   :  { %1174 = vsyncadd [#allocation3], 4294967280 }
   0xf   :  { %17 = sfence }
  0x10   :  { %18 = vsyncpa [#allocation6], 0 }
  0x11   :  { %19 = vsyncpa [#allocation9], 0 }
  0x12   :  { %21 = vsyncpa [#allocation9 + $0x1], 0 }
  0x13   :  { %22 = vsyncpa [#allocation7], 0 }
  0x14   :  { %24 = vsyncpa [#allocation7 + $0x1], 0  ;;  %s1290_s29 = smov 0   ;;  %s1292_s0 = smov 0  }
  0x15   :  { %s1294_s30 = smov 0   ;;  %s1296_s8 = smov 0  }
  0x16   :  { %s1298_s9 = smov 0   ;;  %s1300_s10 = smov 0  }
  0x17   :  { %s1302_s11 = smov 0   ;;  %s1304_s12 = smov 0  }
  0x18   :  { %s1306_s13 = smov 0   ;;  %s1308_s14 = smov 0  }
  0x19   :  { %s1310_s15 = smov 0  }
  0x1a LB: > { %1656 = sst [smem:[#allocation15_spill]] %s1189_s29  ;;  %s785_s16 = sadd.s32 4294967295, %s1229_s15   ;;  %s1229_s15 = sphi %s1310_s15, %s30_s15   ;;  %s1225_s14 = sphi %s1308_s14, %s1697_s14   ;;  %s1221_s13 = sphi %s1306_s13, %s1696_s13   ;;  %s1217_s12 = sphi %s1304_s12, %s1695_s12   ;;  %s1213_s11 = sphi %s1302_s11, %s1694_s11   ;;  %s1209_s10 = sphi %s1300_s10, %s1693_s10   ;;  %s1205_s9 = sphi %s1298_s9, %s1692_s9   ;;  %s1201_s8 = sphi %s1296_s8, %s1691_s8   ;;  %s1197_s30 = sphi %s1294_s30, %s1690_s30   ;;  %s1193_s0 = sphi %s1292_s0, %s1689_s0   ;;  %s1189_s29 = sphi %s1290_s29, %s1688_s29  }
  0x1b   : > { %1657 = sst [smem:[#allocation16_spill]] %s1229_s15  ;;  %s786_s17 = sadd.s32 4294967294, %s1229_s15  }
  0x1c   : > { %p150_p5 = scmp.ne.s32.totalorder %s1209_s10, %s1205_s9  ;;  %p151_p6 = scmp.eq.s32.totalorder %s1229_s15, 0 }
  0x1d   : > { %p156_p7 = scmp.ne.s32.totalorder %s1205_s9, %s1201_s8  ;;  %p1350_p8 = scmp.eq.s32.totalorder %s785_s16, 0 }
  0x1e   : > { %p1355_p9 = por %p151_p6, %p150_p5  ;;  %p207_p10 = scmp.ne.s32.totalorder %s1197_s30, %s1193_s0 }
  0x1f   : > { %s1658_s19 = scalar_select %p1350_p8, 1, 0 }
  0x20   : > { %p1363_p11 = por %p1350_p8, %p156_p7  ;;  %p208_p12 = scmp.eq.s32.totalorder %s785_s16, 7 }
  0x21   : > { %p213_p13 = scmp.ne.s32.totalorder %s1193_s0, %s1189_s29  ;;  %p214_p0 = scmp.eq.s32.totalorder %s786_s17, 7 }
  0x22   : > { %s1660_s22 = scalar_select %p1363_p11, 1, 0 }
  0x23   : > { %p1369_p1 = por %p208_p12, %p207_p10  ;;  %p787_p2 = scmp.ge.s32.totalorder %s1229_s15, 1 }
  0x24   : > { %p1374_p3 = por %p214_p0, %p213_p13  ;;  %p221_p4 = scmp.lt.s32.totalorder %s1229_s15, 9 }
  0x25   : > { %s1661_s23 = scalar_select %p1369_p1, 1, 0 }
  0x26   : > { %s1663_s24 = scalar_select %p1374_p3, 1, 0 }
  0x27   : > { %1662 = sst [smem:[#allocation17_spill]] %s1661_s23  ;;  %p1379_p5 = pnand %p787_p2, %p221_p4 }
  0x28   : > { %1664 = sst [smem:[#allocation18_spill]] %s1663_s24  ;;  %s1232_s26 = smov [#allocation5]  }
  0x29   : > { %s1665_s25 = scalar_select %p1379_p5, 1, 0 }
  0x2a   : > { %s233_s27 = sshll.u32 %s1232_s26, 4  ;;  %p896_p6 = pneg %p1379_p5  ;;  %s234_s27 = int_to_ptr.vmem [resolvable:$true] %s233_s27 }
  0x2b   : > { %p909_p7 = scmp.lt.s32.totalorder %s1229_s15, 8  ;;  %s1668_s3 = sld [smem:[#allocation20_spill]] }
  0x2c   : > { %p1388_p10 = pnand %p896_p6, %p1350_p8 }
  0x2d   : > { %p1394_p12 = pnand %p909_p7, %p1355_p9 }
  0x2e   : > { %p1045_p0 = pneg %p1388_p10 }
  0x2f   : > { %s1667_s8 = scalar_select %p1394_p12, 1, 0 }
  0x31   : > { %s1043_s20 = scalar_lea.hbm %s1668_s3, 1024 }
  0x32   : > { %p1044_p13 = scmp.ne.s32.totalorder %s1668_s3, %s1043_s20  ;;  %p1050_p6 = scmp.lt.u32.totalorder %s1043_s20, %s1668_s3 }
  0x34   : > { %p1046_p2 = pnand %p1045_p0, %p1044_p13 }
  0x36   : > { %p1047_p4 = pneg %p1046_p2 }
  0x38   : > { %p1052_p9 = pnand %p1050_p6, %p1047_p4 }
  0x3a   : > { %1055 = shalt.err (!%p1052_p9)
}
  0x3b   : > { %s1056_s21 = scalar_lea.vmem %s234_s27, 1024  ;;  %p1064_p11 = scmp.lt.s32.totalorder %s234_s27, %s234_s27 }
  0x3c   : > { %p1057_p7 = scmp.ne.s32.totalorder %s234_s27, %s1056_s21  ;;  %p1065_p8 = scmp.lt.s32.totalorder %s1056_s21, %s1056_s21 }
  0x3e   : > { %p1059_p3 = pnand %p1057_p7, %p1045_p0  ;;  %p1066_p5 = por %p1065_p8, %p1064_p11 }
  0x40   : > { %p1060_p1 = pneg %p1059_p3 }
  0x42   : > { %p1067_p12 = pnand %p1066_p5, %p1060_p1 }
  0x44   : > { %1070 = shalt.err (!%p1067_p12)
}
  0x45   : > { %s1646_s18 = smov 64   ;;  %s1647_s29 = smov 4  }
  0x46   : > { %899 = dma.hbm_to_vmem [thread:$0]  (!%p1388_p10), %s1668_s3, 1024, %s234_s27, [#allocation6], %s1646_s18, %s1646_s18, %s1647_s29  }
  0x47   : > { %s39_s16 = sadd.s32 1, %s1221_s13  ;;  %s42_s17 = sadd.s32 1, %s1225_s14 }
  0x48   : > { %p40_p8 = scmp.ge.s32.totalorder %s39_s16, 2  ;;  %s268_s26 = sand.u32 1, %s1209_s10  }
  0x49   : > { %s790_s21 = sshll.u32 %s268_s26, 6  ;;  %s791_s15 = sshll.u32 %s1221_s13, 6 }
  0x4a   : > { %s1699_s16 = smov (%p40_p8, %s39_s16), 0  ;;  %s1701_s17 = smov (!%p40_p8, %s42_s17), %s1225_s14 }
  0x4b   : > { %1669 = sst [smem:[#allocation19_spill]] %s1699_s16  ;;  %s140_s28 = ssub.s32 %s1221_s13, %s1699_s16 }
  0x4c   : > { %p44_p11 = scmp.ge.s32.totalorder %s1701_s17, 4  ;;  %p141_p1 = scmp.eq.s32.totalorder %s140_s28, 0 }
  0x4d   : > { %s272_s20 = scalar_lea.vmem [#allocation8], %s790_s21  ;;  %s1670_s27 = sadd.s32 1, %s1209_s10 }
  0x4e   : > { %s278_s24 = sshll.u32 %s272_s20, 4  ;;  %s1703_s17 = smov (%p44_p11, %s1701_s17), 0  ;;  %s1442_s24 = int_to_ptr.vmem [resolvable:$true] %s278_s24 }
  0x4f   : > { %s1431_s18 = scalar_select %p141_p1, %s1209_s10, %s1670_s27  }
  0x50   : > { %s192_s29 = ssub.s32 %s1225_s14, %s1703_s17  ;;  %s1671_s5 = sld [smem:[#allocation21_spill]] }
  0x51   : > { %s1440_s16 = sor.u32 %s192_s29, %s140_s28  ;;  %s1445_s21 = scalar_lea.sflag [#allocation9], %s268_s26 }
  0x52   : > { %p195_p3 = scmp.eq.s32.totalorder %s1440_s16, 0  ;;  %p1672_p10 = scmp.ne.s32.totalorder %s1667_s8, 0 }
  0x54   : > { %p1073_p12 = pneg %p1672_p10 }
  0x56   : > { %s1438_s23 = scalar_lea.hbm %s1671_s5, %s791_s15  ;;  %s1076_s15 = scalar_lea.hbm %s1671_s5, 2048 }
  0x57   : > { %s1071_s20 = scalar_lea.hbm %s1438_s23, 1024  ;;  %p1077_p2 = scmp.lt.u32.totalorder %s1438_s23, %s1671_s5 }
  0x58   : > { %p1072_p5 = scmp.ne.s32.totalorder %s1438_s23, %s1071_s20  ;;  %p1078_p4 = scmp.lt.u32.totalorder %s1076_s15, %s1071_s20 }
  0x59   : > { %p1080_p9 = scmp.lt.u32.totalorder %s1071_s20, %s1438_s23 }
  0x5a   : > { %p1074_p13 = pnand %p1073_p12, %p1072_p5  ;;  %p1079_p6 = por %p1078_p4, %p1077_p2 }
  0x5c   : > { %p1075_p0 = pneg %p1074_p13  ;;  %p1081_p7 = por %p1080_p9, %p1079_p6 }
  0x5e   : > { %p1082_p8 = pnand %p1081_p7, %p1075_p0 }
  0x60   : > { %1085 = shalt.err (!%p1082_p8)
}
  0x61   : > { %s1086_s26 = scalar_lea.vmem %s1442_s24, 1024  ;;  %s1235_s27 = smov [#allocation8]  }
  0x62   : > { %p1087_p11 = scmp.ne.s32.totalorder %s1442_s24, %s1086_s26  ;;  %s1091_s3 = sshll.u32 %s1235_s27, 4  ;;  %s1092_s3 = int_to_ptr.vmem [resolvable:$false] %s1091_s3 }
  0x63   : > { %s1093_s7 = scalar_lea.vmem %s1092_s3, 2048  ;;  %p1094_p13 = scmp.lt.s32.totalorder %s1442_s24, %s1092_s3 }
  0x64   : > { %p1089_p1 = pnand %p1087_p11, %p1073_p12  ;;  %p1095_p2 = scmp.lt.s32.totalorder %s1093_s7, %s1086_s26 }
  0x66   : > { %p1090_p5 = pneg %p1089_p1  ;;  %p1096_p4 = por %p1095_p2, %p1094_p13 }
  0x68   : > { %p1097_p6 = pnand %p1096_p4, %p1090_p5 }
  0x6a   : > { %1100 = shalt.err (!%p1097_p6)
}
  0x6b   : > { %s1236_s20 = smov 128   ;;  %s1673_s15 = smov 4  }
  0x6c   : > { %s1674_s29 = smov 64   ;;  %s1675_s28 = sadd.s32 1, %s1197_s30 }
  0x6d   : > { %903 = dma.hbm_to_vmem [thread:$0]  (!%p1672_p10), %s1438_s23, 1024, %s1442_s24, %s1445_s21, %s1236_s20, %s1674_s29, %s1673_s15  }
  0x6e   : > { %s1480_s27 = scalar_select %p195_p3, %s1197_s30, %s1675_s28  }
  0x6f   : > { %p1676_p12 = scmp.ne.s32.totalorder %s1665_s25, 0 }
  0x70   : > { %p1677_p0 = scmp.ne.s32.totalorder (!%p1676_p12), %s1658_s19, 0 }
  0x71   : > { %296 = sbr.rel (%p1676_p12) target bundleno = 823 (0x337), region = 44 }
  0x78   : > { %1176 = dma.done.wait (%p1677_p0), [#allocation6], 1024  }
  0x79   : > { %1178 = vsyncadd (%p1677_p0), [#allocation6], 4294966272  ;;  %s302_s8 = sand.u32 1, %s1205_s9   ;;  %p1678_p10 = scmp.ne.s32.totalorder %s1660_s22, 0 }
  0x7a   : > { %s794_s26 = sshll.u32 %s302_s8, 6  ;;  %s303_s3 = scalar_lea.sflag [#allocation9], %s302_s8 }
  0x7b   : > { %s1489_s7 = scalar_lea.vmem [#allocation8], %s794_s26 }
  0x7c   : > { %1180 = dma.done.wait (%p1678_p10), %s303_s3, 1024  }
  0x7d   : > { %1182 = vsyncadd (%p1678_p10), %s303_s3, 4294966272  ;;  %s1652_s19 = sand.u32 1, %s1193_s0   ;;  %s796_s23 = sshll.u32 %s1217_s12, 1 }
  0x7e   : > { %s1498_s25 = sld [smem:[#allocation4 + %s1217_s12]]  ;;  %s795_s16 = sshll.u32 %s1652_s19, 4 }
  0x7f   : > { %p349_p3 = scmp.lt.s32.totalorder %s796_s23, 7  ;;  %p360_p9 = scmp.lt.s32.totalorder %s1213_s11, 1 }
  0x80   : > { %s1518_s5 = scalar_lea.vmem [#allocation10], %s795_s16 }
  0x81   : > { %s1705_s23 = smov (!%p349_p3, %s796_s23), 7 }
  0x82   : > { %s1504_s24 = scalar_select %p360_p9, %s1213_s11, 1 }
  0x83   : > { %s797_s22 = sshll.u32 %s1705_s23, 3 }
  0x84   : > { %s352_s15 = scalar_lea.vmem %s1629_s1, %s797_s22  ;;  %s1512_s8 = scalar_lea.vmem %s1630_s2, %s797_s22 }
  0x85   : > { %s362_s19 = scalar_lea.vmem %s1634_s6, %s1504_s24  ;;  %p800_p7 = scmp.ne.s32.totalorder %s1498_s25, 0 }
  0x86   : > { %v1237_v0 = vmov (!%p800_p7), 0.0  }
  0x87   : > { %369 = sbr.rel (%p800_p7) target bundleno = 142 (0x8e), region = 56  ;;  %370 = vst [vmem:[%s1518_s5] sm:$0xff] (!%p800_p7), %v1237_v0  ;;  %371 = vst [vmem:[%s1518_s5 + $0x8] sm:$0xff] (!%p800_p7), %v1237_v0 }
  0x8e PF: > { %p801_p8 = scmp.le.s32.totalorder %s1498_s25, 0 }
  0x8f   : > { %v1524_v1 = vld [vmem:[%s352_s15] sm:$0xff] (!%p801_p8)  ;;  %v1526_v2 = vld [vmem:[%s352_s15 + $0x8] sm:$0xff] (!%p801_p8)  ;;  %p802_p11 = scmp.ne.s32.totalorder (!%p801_p8), %s1213_s11, 0 }
  0x90   : > { %375 = sbr.rel (%p801_p8) target bundleno = 793 (0x319), region = 60 }
  0x97   : > { %381 = sbr.rel (%p802_p11) target bundleno = 405 (0x195), region = 64  ;;  %v1014_v3 = vld [vmem:[#allocation5] sm:$0xff] (!%p802_p11)   ;;  %v1238_v4 = vmov (!%p802_p11), 0.0   ;;  %v1015_v5 = vld [vmem:[#allocation5 + $0x8] sm:$0xff] (!%p802_p11)   ;;  %vm1239_vm0 = vmmov (!%p802_p11), 0   ;;  %v1016_v6 = vld [vmem:[#allocation5 + $0x10] sm:$0xff] (!%p802_p11)  }
  0x98   : > { %848 = vmatprep.subr.bf16.mxu0 (!%p802_p11), %v1238_v4  ;;  %864 = vmatprep.mubr.msk.bf16.mxu0 (!%p802_p11), %vm1239_vm0, %v1238_v4  ;;  %v1017_v7 = vld [vmem:[#allocation5 + $0x18] sm:$0xff] (!%p802_p11)   ;;  %v1018_v8 = vld [vmem:[#allocation5 + $0x20] sm:$0xff] (!%p802_p11)   ;;  %v1019_v9 = vld [vmem:[#allocation5 + $0x28] sm:$0xff] (!%p802_p11)  }
  0x99   : > { %849 = vmatpush3.bf16.msra.mxu0 (!%p802_p11), %v1014_v3  ;;  %v1020_v10 = vld [vmem:[#allocation5 + $0x30] sm:$0xff] (!%p802_p11)   ;;  %v1021_v11 = vld [vmem:[#allocation5 + $0x38] sm:$0xff] (!%p802_p11)   ;;  %v383_v13 = vld [vmem:[%s1512_s8 + $0x8] sm:$0xff] (!%p802_p11) }
  0x9a   : > { %850 = vmatprep.subr.bf16.mxu0 (!%p802_p11), %v1238_v4  ;;  %v382_v12 = vld [vmem:[%s1512_s8] sm:$0xff] (!%p802_p11) }
  0x9b   : > { %v384_v14 = vpack.c.bf16 (!%p802_p11), %v383_v13, %v382_v12  ;;  %v803_v15 = vld [vmem:[%s1632_s4] ss:$0 sm:$0xff] (!%p802_p11) }
  0x9d   : > { %851 = vmatpush3.bf16.msra.mxu0 (!%p802_p11), %v1015_v5 }
  0x9e   : > { %852 = vmatprep.subr.bf16.mxu0 %v1238_v4 }
  0xa1   : > { %853 = vmatpush3.bf16.msra.mxu0 %v1016_v6 }
  0xa2   : > { %854 = vmatprep.subr.bf16.mxu0 %v1238_v4 }
  0xa5   : > { %855 = vmatpush3.bf16.msra.mxu0 %v1017_v7 }
  0xa6   : > { %856 = vmatprep.subr.bf16.mxu0 %v1238_v4 }
  0xa9   : > { %857 = vmatpush3.bf16.msra.mxu0 %v1018_v8 }
  0xaa   : > { %858 = vmatprep.subr.bf16.mxu0 %v1238_v4 }
  0xad   : > { %859 = vmatpush3.bf16.msra.mxu0 %v1019_v9 }
  0xae   : > { %860 = vmatprep.subr.bf16.mxu0 %v1238_v4 }
  0xb1   : > { %861 = vmatpush3.bf16.msra.mxu0 %v1020_v10 }
  0xb2   : > { %862 = vmatprep.subr.bf16.mxu0 %v1238_v4 }
  0xb5   : > { %863 = vmatpush3.bf16.msra.mxu0 %v1021_v11 }
  0xb8   : > { %865 = vmatmul.mubr.bf16.vlgmr.msra.gmra.mrb[0].mxu0 %v384_v14 }
 0x18b   : > { %v490_v16 = vpop.f32.mrb[0].mxu0 }
 0x18c   : > { %v491_v17 = vadd.f32 %v803_v15, %v490_v16  ;;  %v866_v18 = vpop.f32.mrb[1].mxu0 }
 0x18d   : > { %v493_v19 = vpop.f32.mrb[2].mxu0 }
 0x18e   : > { %v494_v20 = vadd.f32 %v803_v15, %v493_v19  ;;  %v867_v21 = vpop.f32.mrb[3].mxu0  ;;  %v497_v22 = vmax.f32 %v491_v17, 0.0 }
 0x190   : > { %v498_v23 = vmax.f32 %v494_v20, 0.0 }
 0x192   : > { %v499_v24 = vpack.c.bf16 %v498_v23, %v497_v22 }
 0x194   : > { %500 = vst [vmem:[#allocation2] sm:$0xff] %v499_v24 }
 0x195 PF: > { %v1022_v25 = vld [vmem:[%s1489_s7] sm:$0xff]   ;;  %v1240_v26 = vmov 0.0   ;;  %v1023_v27 = vld [vmem:[%s1489_s7 + $0x8] sm:$0xff]   ;;  %vm1241_vm1 = vmmov 0   ;;  %v1024_v28 = vld [vmem:[%s1489_s7 + $0x10] sm:$0xff]   ;;  %p821_p1 = scmp.ne.s32.totalorder %s1498_s25, 2 }
 0x196   : > { %868 = vmatprep.subr.bf16.mxu0 %v1240_v26  ;;  %884 = vmatprep.mubr.msk.bf16.mxu0 %vm1241_vm1, %v1240_v26  ;;  %v1025_v29 = vld [vmem:[%s1489_s7 + $0x18] sm:$0xff]   ;;  %v1026_v30 = vld [vmem:[%s1489_s7 + $0x20] sm:$0xff]   ;;  %v1027_v31 = vld [vmem:[%s1489_s7 + $0x28] sm:$0xff]  }
 0x197   : > { %869 = vmatpush3.bf16.msra.mxu0 %v1022_v25  ;;  %v1028_v32 = vld [vmem:[%s1489_s7 + $0x30] sm:$0xff]   ;;  %v1029_v33 = vld [vmem:[%s1489_s7 + $0x38] sm:$0xff]  }
 0x198   : > { %870 = vmatprep.subr.bf16.mxu0 %v1240_v26  ;;  %v812_v35 = vld [vmem:[%s362_s19] ss:$0 sm:$0xff] }
 0x19b   : > { %871 = vmatpush3.bf16.msra.mxu0 %v1023_v27  ;;  %v501_v34 = vld [vmem:[#allocation2] sm:$0xff] }
 0x19c   : > { %872 = vmatprep.subr.bf16.mxu0 %v1240_v26 }
 0x19f   : > { %873 = vmatpush3.bf16.msra.mxu0 %v1024_v28 }
 0x1a0   : > { %874 = vmatprep.subr.bf16.mxu0 %v1240_v26 }
 0x1a3   : > { %875 = vmatpush3.bf16.msra.mxu0 %v1025_v29 }
 0x1a4   : > { %876 = vmatprep.subr.bf16.mxu0 %v1240_v26 }
 0x1a7   : > { %877 = vmatpush3.bf16.msra.mxu0 %v1026_v30 }
 0x1a8   : > { %878 = vmatprep.subr.bf16.mxu0 %v1240_v26 }
 0x1ab   : > { %879 = vmatpush3.bf16.msra.mxu0 %v1027_v31 }
 0x1ac   : > { %880 = vmatprep.subr.bf16.mxu0 %v1240_v26 }
 0x1af   : > { %881 = vmatpush3.bf16.msra.mxu0 %v1028_v32 }
 0x1b0   : > { %882 = vmatprep.subr.bf16.mxu0 %v1240_v26 }
 0x1b3   : > { %883 = vmatpush3.bf16.msra.mxu0 %v1029_v33 }
 0x1b6   : > { %885 = vmatmul.mubr.bf16.vlgmr.msra.gmra.mrb[0].mxu0 %v501_v34 }
 0x286   : > { %617 = sbr.rel (%p821_p1) target bundleno = 655 (0x28f), region = 68 }
 0x289   : > { %v607_v36 = vpop.f32.mrb[0].mxu0 }
 0x28a   : > { %v608_v37 = vadd.f32 %v812_v35, %v607_v36  ;;  %v886_v38 = vpop.f32.mrb[1].mxu0 }
 0x28b   : > { %v610_v39 = vpop.f32.mrb[2].mxu0 }
 0x28c   : > { %v611_v40 = vadd.f32 %v812_v35, %v610_v39  ;;  %v887_v41 = vpop.f32.mrb[3].mxu0  ;;  %618 = vst [vmem:[%s1518_s5] sm:$0xff] (!%p821_p1), %v608_v37 }
 0x28e   : > { %619 = vst [vmem:[%s1518_s5 + $0x8] sm:$0xff] %v611_v40 }
 0x28f PF: > { %p822_p5 = scmp.ne.s32.totalorder %s1498_s25, 1 }
 0x290   : > { %v1242_v42 = vmov (!%p822_p5), 0  }
 0x291   : > { %623 = sbr.rel (%p822_p5) target bundleno = 793 (0x319), region = 72  ;;  %1030 = vset.pattern.permute.xlu0 (!%p822_p5), %v1242_v42 }
 0x292   : > { %626 = vperm.xlu0 (!%p822_p5), %1030, %v1524_v1  }
 0x296   : > { %631 = vperm.xlu0 (!%p822_p5), %1030, %v1526_v2  }
 0x311   : > { %v627_v43 = vpop.permute.xlu0 %626 }
 0x312   : > { %v634_v44 = vmul.f32 %v627_v43, %v608_v37 }
 0x314   : > { %636 = vst [vmem:[%s1518_s5] sm:$0xff] %v634_v44 }
 0x315   : > { %v632_v45 = vpop.permute.xlu0 %631 }
 0x316   : > { %v635_v46 = vmul.f32 %v632_v45, %v611_v40 }
 0x318   : > { %637 = vst [vmem:[%s1518_s5 + $0x8] sm:$0xff] %v635_v46 }
 0x319 PF: > { %s1679_s7 = sld [smem:[#allocation17_spill]]  ;;  %s829_s19 = sshll.u32 %s1217_s12, 2 }
 0x31a   : > { %s651_s25 = sadd.s32 %s1213_s11, %s829_s19  ;;  %s654_s24 = sshll.u32 %s1518_s5, 4  ;;  %s1558_s24 = int_to_ptr.vmem [resolvable:$true] %s654_s24 }
 0x31b   : > { %s826_s20 = sshll.u32 %s651_s25, 7  ;;  %s1680_s28 = sld [smem:[#allocation22_spill]] }
 0x31c   : > { %s1681_s26 = sand.u32 1, %s1193_s0   ;;  %s1101_s23 = scalar_lea.vmem %s1558_s24, 256 }
 0x31d   : > { %s1567_s3 = scalar_lea.sflag [#allocation7], %s1681_s26  ;;  %p1102_p13 = scmp.ne.s32.totalorder %s1558_s24, %s1101_s23 }
 0x31e   : > { %s1243_s5 = smov [#allocation10]  }
 0x31f   : > { %p1682_p2 = scmp.ne.s32.totalorder %s1679_s7, 0  ;;  %s1105_s11 = sshll.u32 %s1243_s5, 4  ;;  %s1106_s11 = int_to_ptr.vmem [resolvable:$false] %s1105_s11 }
 0x320   : > { %s1107_s12 = scalar_lea.vmem %s1106_s11, 512  ;;  %p1108_p12 = scmp.lt.s32.totalorder %s1558_s24, %s1106_s11 }
 0x321   : > { %s1563_s8 = scalar_lea.hbm %s1680_s28, %s826_s20  ;;  %p1103_p4 = pnand %p1102_p13, %p1682_p2 }
 0x322   : > { %p1109_p0 = scmp.lt.s32.totalorder %s1107_s12, %s1101_s23 }
 0x323   : > { %p1104_p6 = pneg %p1103_p4 }
 0x324   : > { %p1110_p10 = por %p1109_p0, %p1108_p12 }
 0x326   : > { %p1111_p3 = pnand %p1110_p10, %p1104_p6 }
 0x328   : > { %1114 = shalt.err (!%p1111_p3)
}
 0x329   : > { %s1115_s16 = scalar_lea.hbm %s1563_s8, 256  ;;  %s1119_s19 = scalar_lea.hbm %s1680_s28, 2048 }
 0x32a   : > { %p1116_p9 = scmp.ne.s32.totalorder %s1563_s8, %s1115_s16  ;;  %p1120_p11 = scmp.lt.u32.totalorder %s1563_s8, %s1680_s28 }
 0x32b   : > { %p1121_p1 = scmp.lt.u32.totalorder %s1119_s19, %s1115_s16  ;;  %p1123_p13 = scmp.lt.u32.totalorder %s1115_s16, %s1563_s8 }
 0x32c   : > { %p1117_p7 = pnand %p1116_p9, %p1682_p2 }
 0x32d   : > { %p1122_p5 = por %p1121_p1, %p1120_p11 }
 0x32e   : > { %p1118_p8 = pneg %p1117_p7 }
 0x32f   : > { %p1124_p4 = por %p1123_p13, %p1122_p5 }
 0x331   : > { %p1125_p6 = pnand %p1124_p4, %p1118_p8 }
 0x333   : > { %1128 = shalt.err (!%p1125_p6)
}
 0x334   : > { %s1244_s15 = smov 128   ;;  %s1245_s29 = smov 256  }
 0x335   : > { %s1246_s26 = smov 8  }
 0x336   : > { %894 = dma.vmem_to_hbm [thread:$0]  (%p1682_p2), %s1558_s24, 256, %s1563_s8, %s1567_s3, %s1244_s15, %s1245_s29, %s1246_s26  }
 0x337 PF: > { %s1683_s23 = sld [smem:[#allocation16_spill]]  ;;  %s1684_s5 = sld [smem:[#allocation15_spill]] }
 0x338   : > { %s1685_s11 = sld [smem:[#allocation18_spill]] }
 0x33d   : > { %p911_p12 = scmp.ge.s32.totalorder %s1683_s23, 2  ;;  %s669_s12 = sand.u32 1, %s1684_s5  }
 0x33e   : > { %p1686_p0 = scmp.ne.s32.totalorder %s1685_s11, 0  ;;  %s670_s16 = scalar_lea.sflag [#allocation7], %s669_s12 }
 0x340   : > { %p905_p10 = pnand %p911_p12, %p1686_p0 }
 0x342   : > { %1184 = dma.done.wait (!%p905_p10), %s670_s16, 256  }
 0x343   : > { %1186 = vsyncadd (!%p905_p10), %s670_s16, 4294967040  ;;  %s30_s15 = sadd.s32 1, %s1683_s23   ;;  %s1687_s7 = sld [smem:[#allocation19_spill]] }
 0x344   : > { %p27_p3 = scmp.ge.s32.totalorder %s30_s15, 10   ;;  %s1688_s29 = smov %s1193_s0 }
 0x345   : > { %s1689_s0 = smov %s1197_s30  ;;  %s1690_s30 = smov %s1480_s27 }
 0x346   : > { %s1691_s8 = smov %s1205_s9  ;;  %s1692_s9 = smov %s1209_s10 }
 0x347   : > { %s1693_s10 = smov %s1431_s18  ;;  %s1694_s11 = smov %s1221_s13 }
 0x348   : > { %s1695_s12 = smov %s1225_s14  ;;  %s1697_s14 = smov %s1703_s17 }
 0x349   : > { %s1696_s13 = smov %s1687_s7  ;;  %29 = sbr.rel (!%p27_p3) target bundleno = 26 (0x1a), region = 123 }
 0x350   :  { %675 = vsyncpa [#allocation6], 1 }
 0x351   :  { %677 = vsyncpa [#allocation6 + $0x1], 1 }
 0x352   :  { %678 = vsyncpa [#allocation9], 1 }
 0x353   :  { %680 = vsyncpa [#allocation9 + $0x1], 1 }
 0x354   :  { %681 = vsyncpa [#allocation7], 1 }
 0x355   :  { %683 = vsyncpa [#allocation7 + $0x1], 1 }

// kernel: tpu_custom_call.1
= control target key start
LH: loop header
LB: loop body
LE: loop exit
PB: predicated region body
PF: predicated region fallthrough
CT: control target
= control target key end

     0   :  { %s1628_s0 = inlined_call_operand.vmem [shape: s32[4], index: 0, kind: input, shape index: {}]   ;;  %s1629_s1 = inlined_call_operand.vmem [shape: f32[64,1], index: 1, kind: input, shape index: {}]   ;;  %s1630_s2 = inlined_call_operand.vmem [shape: f32[64,128], index: 2, kind: input, shape index: {}]   ;;  %s1631_s3 = inlined_call_operand.hbm [shape: bf16[128,128], index: 3, kind: input, shape index: {}]   ;;  %s1632_s4 = inlined_call_operand.vmem [shape: f32[1,128], index: 4, kind: input, shape index: {}]   ;;  %s1633_s5 = inlined_call_operand.hbm [shape: bf16[128,256], index: 5, kind: input, shape index: {}]   ;;  %s1634_s6 = inlined_call_operand.vmem [shape: f32[1,256], index: 6, kind: input, shape index: {}]   ;;  %s1635_s7 = inlined_call_operand.hbm [shape: f32[64,256], index: 7, kind: output, shape index: {}]  }
   0x1   :  { %1653 = sst [smem:[#allocation20_spill]] %s1631_s3  ;;  %s12_s26 = sshll.u32 %s1628_s0, 4  ;;  %s13_s26 = int_to_ptr.vmem [resolvable:$true] %s12_s26 }
   0x2   :  { %1654 = sst [smem:[#allocation21_spill]] %s1633_s5  ;;  %s1031_s27 = scalar_lea.vmem %s13_s26, 16 }
   0x3   :  { %1655 = sst [smem:[#allocation22_spill]] %s1635_s7  ;;  %p1032_p0 = scmp.ne.s32.totalorder %s13_s26, %s1031_s27 }
   0x4   :  { %p1036_p1 = scmp.lt.s32.totalorder %s13_s26, %s13_s26  ;;  %p1037_p2 = scmp.lt.s32.totalorder %s1031_s27, %s1031_s27 }
   0x6   :  { %p1038_p3 = por %p1037_p2, %p1036_p1 }
   0x8   :  { %p1039_p4 = pnand %p1038_p3, %p1032_p0 }
   0xa   :  { %1042 = shalt.err (!%p1039_p4)  }
   0xb   :  { %s1231_s28 = smov [#allocation4]  }
   0xc   :  { %15 = dma.vmem_to_smem %s13_s26, 16, %s1231_s28, [#allocation3] }
   0xd   :  { %1173 = dma.done.wait [#allocation3], 16 }
   0xe   :  { %1174 = vsyncadd [#allocation3], 4294967280 }
   0xf   :  { %17 = sfence }
  0x10   :  { %18 = vsyncpa [#allocation6], 0 }
  0x11   :  { %19 = vsyncpa [#allocation9], 0 }
  0x12   :  { %21 = vsyncpa [#allocation9 + $0x1], 0 }
  0x13   :  { %22 = vsyncpa [#allocation7], 0 }
  0x14   :  { %24 = vsyncpa [#allocation7 + $0x1], 0  ;;  %s1290_s29 = smov 0   ;;  %s1292_s0 = smov 0  }
  0x15   :  { %s1294_s30 = smov 0   ;;  %s1296_s8 = smov 0  }
  0x16   :  { %s1298_s9 = smov 0   ;;  %s1300_s10 = smov 0  }
  0x17   :  { %s1302_s11 = smov 0   ;;  %s1304_s12 = smov 0  }
  0x18   :  { %s1306_s13 = smov 0   ;;  %s1308_s14 = smov 0  }
  0x19   :  { %s1310_s15 = smov 0  }
  0x1a LB: > { %1656 = sst [smem:[#allocation15_spill]] %s1189_s29  ;;  %s785_s16 = sadd.s32 4294967295, %s1229_s15   ;;  %s1229_s15 = sphi %s1310_s15, %s30_s15   ;;  %s1225_s14 = sphi %s1308_s14, %s1697_s14   ;;  %s1221_s13 = sphi %s1306_s13, %s1696_s13   ;;  %s1217_s12 = sphi %s1304_s12, %s1695_s12   ;;  %s1213_s11 = sphi %s1302_s11, %s1694_s11   ;;  %s1209_s10 = sphi %s1300_s10, %s1693_s10   ;;  %s1205_s9 = sphi %s1298_s9, %s1692_s9   ;;  %s1201_s8 = sphi %s1296_s8, %s1691_s8   ;;  %s1197_s30 = sphi %s1294_s30, %s1690_s30   ;;  %s1193_s0 = sphi %s1292_s0, %s1689_s0   ;;  %s1189_s29 = sphi %s1290_s29, %s1688_s29  }
  0x1b   : > { %1657 = sst [smem:[#allocation16_spill]] %s1229_s15  ;;  %s786_s17 = sadd.s32 4294967294, %s1229_s15  }
  0x1c   : > { %p150_p5 = scmp.ne.s32.totalorder %s1209_s10, %s1205_s9  ;;  %p151_p6 = scmp.eq.s32.totalorder %s1229_s15, 0 }
  0x1d   : > { %p156_p7 = scmp.ne.s32.totalorder %s1205_s9, %s1201_s8  ;;  %p1350_p8 = scmp.eq.s32.totalorder %s785_s16, 0 }
  0x1e   : > { %p1355_p9 = por %p151_p6, %p150_p5  ;;  %p207_p10 = scmp.ne.s32.totalorder %s1197_s30, %s1193_s0 }
  0x1f   : > { %s1658_s19 = scalar_select %p1350_p8, 1, 0 }
  0x20   : > { %p1363_p11 = por %p1350_p8, %p156_p7  ;;  %p208_p12 = scmp.eq.s32.totalorder %s785_s16, 7 }
  0x21   : > { %p213_p13 = scmp.ne.s32.totalorder %s1193_s0, %s1189_s29  ;;  %p214_p0 = scmp.eq.s32.totalorder %s786_s17, 7 }
  0x22   : > { %s1660_s22 = scalar_select %p1363_p11, 1, 0 }
  0x23   : > { %p1369_p1 = por %p208_p12, %p207_p10  ;;  %p787_p2 = scmp.ge.s32.totalorder %s1229_s15, 1 }
  0x24   : > { %p1374_p3 = por %p214_p0, %p213_p13  ;;  %p221_p4 = scmp.lt.s32.totalorder %s1229_s15, 9 }
  0x25   : > { %s1661_s23 = scalar_select %p1369_p1, 1, 0 }
  0x26   : > { %s1663_s24 = scalar_select %p1374_p3, 1, 0 }
  0x27   : > { %1662 = sst [smem:[#allocation17_spill]] %s1661_s23  ;;  %p1379_p5 = pnand %p787_p2, %p221_p4 }
  0x28   : > { %1664 = sst [smem:[#allocation18_spill]] %s1663_s24  ;;  %s1232_s26 = smov [#allocation5]  }
  0x29   : > { %s1665_s25 = scalar_select %p1379_p5, 1, 0 }
  0x2a   : > { %s233_s27 = sshll.u32 %s1232_s26, 4  ;;  %p896_p6 = pneg %p1379_p5  ;;  %s234_s27 = int_to_ptr.vmem [resolvable:$true] %s233_s27 }
  0x2b   : > { %p909_p7 = scmp.lt.s32.totalorder %s1229_s15, 8  ;;  %s1668_s3 = sld [smem:[#allocation20_spill]] }
  0x2c   : > { %p1388_p10 = pnand %p896_p6, %p1350_p8 }
  0x2d   : > { %p1394_p12 = pnand %p909_p7, %p1355_p9 }
  0x2e   : > { %p1045_p0 = pneg %p1388_p10 }
  0x2f   : > { %s1667_s8 = scalar_select %p1394_p12, 1, 0 }
  0x31   : > { %s1043_s20 = scalar_lea.hbm %s1668_s3, 1024 }
  0x32   : > { %p1044_p13 = scmp.ne.s32.totalorder %s1668_s3, %s1043_s20  ;;  %p1050_p6 = scmp.lt.u32.totalorder %s1043_s20, %s1668_s3 }
  0x34   : > { %p1046_p2 = pnand %p1045_p0, %p1044_p13 }
  0x36   : > { %p1047_p4 = pneg %p1046_p2 }
  0x38   : > { %p1052_p9 = pnand %p1050_p6, %p1047_p4 }
  0x3a   : > { %1055 = shalt.err (!%p1052_p9)
}
  0x3b   : > { %s1056_s21 = scalar_lea.vmem %s234_s27, 1024  ;;  %p1064_p11 = scmp.lt.s32.totalorder %s234_s27, %s234_s27 }
  0x3c   : > { %p1057_p7 = scmp.ne.s32.totalorder %s234_s27, %s1056_s21  ;;  %p1065_p8 = scmp.lt.s32.totalorder %s1056_s21, %s1056_s21 }
  0x3e   : > { %p1059_p3 = pnand %p1057_p7, %p1045_p0  ;;  %p1066_p5 = por %p1065_p8, %p1064_p11 }
  0x40   : > { %p1060_p1 = pneg %p1059_p3 }
  0x42   : > { %p1067_p12 = pnand %p1066_p5, %p1060_p1 }
  0x44   : > { %1070 = shalt.err (!%p1067_p12)
}
  0x45   : > { %s1646_s18 = smov 64   ;;  %s1647_s29 = smov 4  }
  0x46   : > { %899 = dma.hbm_to_vmem [thread:$0]  (!%p1388_p10), %s1668_s3, 1024, %s234_s27, [#allocation6], %s1646_s18, %s1646_s18, %s1647_s29  }
  0x47   : > { %s39_s16 = sadd.s32 1, %s1221_s13  ;;  %s42_s17 = sadd.s32 1, %s1225_s14 }
  0x48   : > { %p40_p8 = scmp.ge.s32.totalorder %s39_s16, 2  ;;  %s268_s26 = sand.u32 1, %s1209_s10  }
  0x49   : > { %s790_s21 = sshll.u32 %s268_s26, 6  ;;  %s791_s15 = sshll.u32 %s1221_s13, 6 }
  0x4a   : > { %s1699_s16 = smov (%p40_p8, %s39_s16), 0  ;;  %s1701_s17 = smov (!%p40_p8, %s42_s17), %s1225_s14 }
  0x4b   : > { %1669 = sst [smem:[#allocation19_spill]] %s1699_s16  ;;  %s140_s28 = ssub.s32 %s1221_s13, %s1699_s16 }
  0x4c   : > { %p44_p11 = scmp.ge.s32.totalorder %s1701_s17, 4  ;;  %p141_p1 = scmp.eq.s32.totalorder %s140_s28, 0 }
  0x4d   : > { %s272_s20 = scalar_lea.vmem [#allocation8], %s790_s21  ;;  %s1670_s27 = sadd.s32 1, %s1209_s10 }
  0x4e   : > { %s278_s24 = sshll.u32 %s272_s20, 4  ;;  %s1703_s17 = smov (%p44_p11, %s1701_s17), 0  ;;  %s1442_s24 = int_to_ptr.vmem [resolvable:$true] %s278_s24 }
  0x4f   : > { %s1431_s18 = scalar_select %p141_p1, %s1209_s10, %s1670_s27  }
  0x50   : > { %s192_s29 = ssub.s32 %s1225_s14, %s1703_s17  ;;  %s1671_s5 = sld [smem:[#allocation21_spill]] }
  0x51   : > { %s1440_s16 = sor.u32 %s192_s29, %s140_s28  ;;  %s1445_s21 = scalar_lea.sflag [#allocation9], %s268_s26 }
  0x52   : > { %p195_p3 = scmp.eq.s32.totalorder %s1440_s16, 0  ;;  %p1672_p10 = scmp.ne.s32.totalorder %s1667_s8, 0 }
  0x54   : > { %p1073_p12 = pneg %p1672_p10 }
  0x56   : > { %s1438_s23 = scalar_lea.hbm %s1671_s5, %s791_s15  ;;  %s1076_s15 = scalar_lea.hbm %s1671_s5, 2048 }
  0x57   : > { %s1071_s20 = scalar_lea.hbm %s1438_s23, 1024  ;;  %p1077_p2 = scmp.lt.u32.totalorder %s1438_s23, %s1671_s5 }
  0x58   : > { %p1072_p5 = scmp.ne.s32.totalorder %s1438_s23, %s1071_s20  ;;  %p1078_p4 = scmp.lt.u32.totalorder %s1076_s15, %s1071_s20 }
  0x59   : > { %p1080_p9 = scmp.lt.u32.totalorder %s1071_s20, %s1438_s23 }
  0x5a   : > { %p1074_p13 = pnand %p1073_p12, %p1072_p5  ;;  %p1079_p6 = por %p1078_p4, %p1077_p2 }
  0x5c   : > { %p1075_p0 = pneg %p1074_p13  ;;  %p1081_p7 = por %p1080_p9, %p1079_p6 }
  0x5e   : > { %p1082_p8 = pnand %p1081_p7, %p1075_p0 }
  0x60   : > { %1085 = shalt.err (!%p1082_p8)
}
  0x61   : > { %s1086_s26 = scalar_lea.vmem %s1442_s24, 1024  ;;  %s1235_s27 = smov [#allocation8]  }
  0x62   : > { %p1087_p11 = scmp.ne.s32.totalorder %s1442_s24, %s1086_s26  ;;  %s1091_s3 = sshll.u32 %s1235_s27, 4  ;;  %s1092_s3 = int_to_ptr.vmem [resolvable:$false] %s1091_s3 }
  0x63   : > { %s1093_s7 = scalar_lea.vmem %s1092_s3, 2048  ;;  %p1094_p13 = scmp.lt.s32.totalorder %s1442_s24, %s1092_s3 }
  0x64   : > { %p1089_p1 = pnand %p1087_p11, %p1073_p12  ;;  %p1095_p2 = scmp.lt.s32.totalorder %s1093_s7, %s1086_s26 }
  0x66   : > { %p1090_p5 = pneg %p1089_p1  ;;  %p1096_p4 = por %p1095_p2, %p1094_p13 }
  0x68   : > { %p1097_p6 = pnand %p1096_p4, %p1090_p5 }
  0x6a   : > { %1100 = shalt.err (!%p1097_p6)
}
  0x6b   : > { %s1236_s20 = smov 128   ;;  %s1673_s15 = smov 4  }
  0x6c   : > { %s1674_s29 = smov 64   ;;  %s1675_s28 = sadd.s32 1, %s1197_s30 }
  0x6d   : > { %903 = dma.hbm_to_vmem [thread:$0]  (!%p1672_p10), %s1438_s23, 1024, %s1442_s24, %s1445_s21, %s1236_s20, %s1674_s29, %s1673_s15  }
  0x6e   : > { %s1480_s27 = scalar_select %p195_p3, %s1197_s30, %s1675_s28  }
  0x6f   : > { %p1676_p12 = scmp.ne.s32.totalorder %s1665_s25, 0 }
  0x70   : > { %p1677_p0 = scmp.ne.s32.totalorder (!%p1676_p12), %s1658_s19, 0 }
  0x71   : > { %296 = sbr.rel (%p1676_p12) target bundleno = 823 (0x337), region = 44 }
  0x78   : > { %1176 = dma.done.wait (%p1677_p0), [#allocation6], 1024  }
  0x79   : > { %1178 = vsyncadd (%p1677_p0), [#allocation6], 4294966272  ;;  %s302_s8 = sand.u32 1, %s1205_s9   ;;  %p1678_p10 = scmp.ne.s32.totalorder %s1660_s22, 0 }
  0x7a   : > { %s794_s26 = sshll.u32 %s302_s8, 6  ;;  %s303_s3 = scalar_lea.sflag [#allocation9], %s302_s8 }
  0x7b   : > { %s1489_s7 = scalar_lea.vmem [#allocation8], %s794_s26 }
  0x7c   : > { %1180 = dma.done.wait (%p1678_p10), %s303_s3, 1024  }
  0x7d   : > { %1182 = vsyncadd (%p1678_p10), %s303_s3, 4294966272  ;;  %s1652_s19 = sand.u32 1, %s1193_s0   ;;  %s796_s23 = sshll.u32 %s1217_s12, 1 }
  0x7e   : > { %s1498_s25 = sld [smem:[#allocation4 + %s1217_s12]]  ;;  %s795_s16 = sshll.u32 %s1652_s19, 4 }
  0x7f   : > { %p349_p3 = scmp.lt.s32.totalorder %s796_s23, 7  ;;  %p360_p9 = scmp.lt.s32.totalorder %s1213_s11, 1 }
  0x80   : > { %s1518_s5 = scalar_lea.vmem [#allocation10], %s795_s16 }
  0x81   : > { %s1705_s23 = smov (!%p349_p3, %s796_s23), 7 }
  0x82   : > { %s1504_s24 = scalar_select %p360_p9, %s1213_s11, 1 }
  0x83   : > { %s797_s22 = sshll.u32 %s1705_s23, 3 }
  0x84   : > { %s352_s15 = scalar_lea.vmem %s1629_s1, %s797_s22  ;;  %s1512_s8 = scalar_lea.vmem %s1630_s2, %s797_s22 }
  0x85   : > { %s362_s19 = scalar_lea.vmem %s1634_s6, %s1504_s24  ;;  %p800_p7 = scmp.ne.s32.totalorder %s1498_s25, 0 }
  0x86   : > { %v1237_v0 = vmov (!%p800_p7), 0.0  }
  0x87   : > { %369 = sbr.rel (%p800_p7) target bundleno = 142 (0x8e), region = 56  ;;  %370 = vst [vmem:[%s1518_s5] sm:$0xff] (!%p800_p7), %v1237_v0  ;;  %371 = vst [vmem:[%s1518_s5 + $0x8] sm:$0xff] (!%p800_p7), %v1237_v0 }
  0x8e PF: > { %p801_p8 = scmp.le.s32.totalorder %s1498_s25, 0 }
  0x8f   : > { %v1524_v1 = vld [vmem:[%s352_s15] sm:$0xff] (!%p801_p8)  ;;  %v1526_v2 = vld [vmem:[%s352_s15 + $0x8] sm:$0xff] (!%p801_p8)  ;;  %p802_p11 = scmp.ne.s32.totalorder (!%p801_p8), %s1213_s11, 0 }
  0x90   : > { %375 = sbr.rel (%p801_p8) target bundleno = 793 (0x319), region = 60 }
  0x97   : > { %381 = sbr.rel (%p802_p11) target bundleno = 405 (0x195), region = 64  ;;  %v1014_v3 = vld [vmem:[#allocation5] sm:$0xff] (!%p802_p11)   ;;  %v1238_v4 = vmov (!%p802_p11), 0.0   ;;  %v1015_v5 = vld [vmem:[#allocation5 + $0x8] sm:$0xff] (!%p802_p11)   ;;  %vm1239_vm0 = vmmov (!%p802_p11), 0   ;;  %v1016_v6 = vld [vmem:[#allocation5 + $0x10] sm:$0xff] (!%p802_p11)  }
  0x98   : > { %848 = vmatprep.subr.bf16.mxu0 (!%p802_p11), %v1238_v4  ;;  %864 = vmatprep.mubr.msk.bf16.mxu0 (!%p802_p11), %vm1239_vm0, %v1238_v4  ;;  %v1017_v7 = vld [vmem:[#allocation5 + $0x18] sm:$0xff] (!%p802_p11)   ;;  %v1018_v8 = vld [vmem:[#allocation5 + $0x20] sm:$0xff] (!%p802_p11)   ;;  %v1019_v9 = vld [vmem:[#allocation5 + $0x28] sm:$0xff] (!%p802_p11)  }
  0x99   : > { %849 = vmatpush3.bf16.msra.mxu0 (!%p802_p11), %v1014_v3  ;;  %v1020_v10 = vld [vmem:[#allocation5 + $0x30] sm:$0xff] (!%p802_p11)   ;;  %v1021_v11 = vld [vmem:[#allocation5 + $0x38] sm:$0xff] (!%p802_p11)   ;;  %v383_v13 = vld [vmem:[%s1512_s8 + $0x8] sm:$0xff] (!%p802_p11) }
  0x9a   : > { %850 = vmatprep.subr.bf16.mxu0 (!%p802_p11), %v1238_v4  ;;  %v382_v12 = vld [vmem:[%s1512_s8] sm:$0xff] (!%p802_p11) }
  0x9b   : > { %v384_v14 = vpack.c.bf16 (!%p802_p11), %v383_v13, %v382_v12  ;;  %v803_v15 = vld [vmem:[%s1632_s4] ss:$0 sm:$0xff] (!%p802_p11) }
  0x9d   : > { %851 = vmatpush3.bf16.msra.mxu0 (!%p802_p11), %v1015_v5 }
  0x9e   : > { %852 = vmatprep.subr.bf16.mxu0 %v1238_v4 }
  0xa1   : > { %853 = vmatpush3.bf16.msra.mxu0 %v1016_v6 }
  0xa2   : > { %854 = vmatprep.subr.bf16.mxu0 %v1238_v4 }
  0xa5   : > { %855 = vmatpush3.bf16.msra.mxu0 %v1017_v7 }
  0xa6   : > { %856 = vmatprep.subr.bf16.mxu0 %v1238_v4 }
  0xa9   : > { %857 = vmatpush3.bf16.msra.mxu0 %v1018_v8 }
  0xaa   : > { %858 = vmatprep.subr.bf16.mxu0 %v1238_v4 }
  0xad   : > { %859 = vmatpush3.bf16.msra.mxu0 %v1019_v9 }
  0xae   : > { %860 = vmatprep.subr.bf16.mxu0 %v1238_v4 }
  0xb1   : > { %861 = vmatpush3.bf16.msra.mxu0 %v1020_v10 }
  0xb2   : > { %862 = vmatprep.subr.bf16.mxu0 %v1238_v4 }
  0xb5   : > { %863 = vmatpush3.bf16.msra.mxu0 %v1021_v11 }
  0xb8   : > { %865 = vmatmul.mubr.bf16.vlgmr.msra.gmra.mrb[0].mxu0 %v384_v14 }
 0x18b   : > { %v490_v16 = vpop.f32.mrb[0].mxu0 }
 0x18c   : > { %v491_v17 = vadd.f32 %v803_v15, %v490_v16  ;;  %v866_v18 = vpop.f32.mrb[1].mxu0 }
 0x18d   : > { %v493_v19 = vpop.f32.mrb[2].mxu0 }
 0x18e   : > { %v494_v20 = vadd.f32 %v803_v15, %v493_v19  ;;  %v867_v21 = vpop.f32.mrb[3].mxu0  ;;  %v497_v22 = vmax.f32 %v491_v17, 0.0 }
 0x190   : > { %v498_v23 = vmax.f32 %v494_v20, 0.0 }
 0x192   : > { %v499_v24 = vpack.c.bf16 %v498_v23, %v497_v22 }
 0x194   : > { %500 = vst [vmem:[#allocation2] sm:$0xff] %v499_v24 }
 0x195 PF: > { %v1022_v25 = vld [vmem:[%s1489_s7] sm:$0xff]   ;;  %v1240_v26 = vmov 0.0   ;;  %v1023_v27 = vld [vmem:[%s1489_s7 + $0x8] sm:$0xff]   ;;  %vm1241_vm1 = vmmov 0   ;;  %v1024_v28 = vld [vmem:[%s1489_s7 + $0x10] sm:$0xff]   ;;  %p821_p1 = scmp.ne.s32.totalorder %s1498_s25, 2 }
 0x196   : > { %868 = vmatprep.subr.bf16.mxu0 %v1240_v26  ;;  %884 = vmatprep.mubr.msk.bf16.mxu0 %vm1241_vm1, %v1240_v26  ;;  %v1025_v29 = vld [vmem:[%s1489_s7 + $0x18] sm:$0xff]   ;;  %v1026_v30 = vld [vmem:[%s1489_s7 + $0x20] sm:$0xff]   ;;  %v1027_v31 = vld [vmem:[%s1489_s7 + $0x28] sm:$0xff]  }
 0x197   : > { %869 = vmatpush3.bf16.msra.mxu0 %v1022_v25  ;;  %v1028_v32 = vld [vmem:[%s1489_s7 + $0x30] sm:$0xff]   ;;  %v1029_v33 = vld [vmem:[%s1489_s7 + $0x38] sm:$0xff]  }
 0x198   : > { %870 = vmatprep.subr.bf16.mxu0 %v1240_v26  ;;  %v812_v35 = vld [vmem:[%s362_s19] ss:$0 sm:$0xff] }
 0x19b   : > { %871 = vmatpush3.bf16.msra.mxu0 %v1023_v27  ;;  %v501_v34 = vld [vmem:[#allocation2] sm:$0xff] }
 0x19c   : > { %872 = vmatprep.subr.bf16.mxu0 %v1240_v26 }
 0x19f   : > { %873 = vmatpush3.bf16.msra.mxu0 %v1024_v28 }
 0x1a0   : > { %874 = vmatprep.subr.bf16.mxu0 %v1240_v26 }
 0x1a3   : > { %875 = vmatpush3.bf16.msra.mxu0 %v1025_v29 }
 0x1a4   : > { %876 = vmatprep.subr.bf16.mxu0 %v1240_v26 }
 0x1a7   : > { %877 = vmatpush3.bf16.msra.mxu0 %v1026_v30 }
 0x1a8   : > { %878 = vmatprep.subr.bf16.mxu0 %v1240_v26 }
 0x1ab   : > { %879 = vmatpush3.bf16.msra.mxu0 %v1027_v31 }
 0x1ac   : > { %880 = vmatprep.subr.bf16.mxu0 %v1240_v26 }
 0x1af   : > { %881 = vmatpush3.bf16.msra.mxu0 %v1028_v32 }
 0x1b0   : > { %882 = vmatprep.subr.bf16.mxu0 %v1240_v26 }
 0x1b3   : > { %883 = vmatpush3.bf16.msra.mxu0 %v1029_v33 }
 0x1b6   : > { %885 = vmatmul.mubr.bf16.vlgmr.msra.gmra.mrb[0].mxu0 %v501_v34 }
 0x286   : > { %617 = sbr.rel (%p821_p1) target bundleno = 655 (0x28f), region = 68 }
 0x289   : > { %v607_v36 = vpop.f32.mrb[0].mxu0 }
 0x28a   : > { %v608_v37 = vadd.f32 %v812_v35, %v607_v36  ;;  %v886_v38 = vpop.f32.mrb[1].mxu0 }
 0x28b   : > { %v610_v39 = vpop.f32.mrb[2].mxu0 }
 0x28c   : > { %v611_v40 = vadd.f32 %v812_v35, %v610_v39  ;;  %v887_v41 = vpop.f32.mrb[3].mxu0  ;;  %618 = vst [vmem:[%s1518_s5] sm:$0xff] (!%p821_p1), %v608_v37 }
 0x28e   : > { %619 = vst [vmem:[%s1518_s5 + $0x8] sm:$0xff] %v611_v40 }
 0x28f PF: > { %p822_p5 = scmp.ne.s32.totalorder %s1498_s25, 1 }
 0x290   : > { %v1242_v42 = vmov (!%p822_p5), 0  }
 0x291   : > { %623 = sbr.rel (%p822_p5) target bundleno = 793 (0x319), region = 72  ;;  %1030 = vset.pattern.permute.xlu0 (!%p822_p5), %v1242_v42 }
 0x292   : > { %626 = vperm.xlu0 (!%p822_p5), %1030, %v1524_v1  }
 0x296   : > { %631 = vperm.xlu0 (!%p822_p5), %1030, %v1526_v2  }
 0x311   : > { %v627_v43 = vpop.permute.xlu0 %626 }
 0x312   : > { %v634_v44 = vmul.f32 %v627_v43, %v608_v37 }
 0x314   : > { %636 = vst [vmem:[%s1518_s5] sm:$0xff] %v634_v44 }
 0x315   : > { %v632_v45 = vpop.permute.xlu0 %631 }
 0x316   : > { %v635_v46 = vmul.f32 %v632_v45, %v611_v40 }
 0x318   : > { %637 = vst [vmem:[%s1518_s5 + $0x8] sm:$0xff] %v635_v46 }
 0x319 PF: > { %s1679_s7 = sld [smem:[#allocation17_spill]]  ;;  %s829_s19 = sshll.u32 %s1217_s12, 2 }
 0x31a   : > { %s651_s25 = sadd.s32 %s1213_s11, %s829_s19  ;;  %s654_s24 = sshll.u32 %s1518_s5, 4  ;;  %s1558_s24 = int_to_ptr.vmem [resolvable:$true] %s654_s24 }
 0x31b   : > { %s826_s20 = sshll.u32 %s651_s25, 7  ;;  %s1680_s28 = sld [smem:[#allocation22_spill]] }
 0x31c   : > { %s1681_s26 = sand.u32 1, %s1193_s0   ;;  %s1101_s23 = scalar_lea.vmem %s1558_s24, 256 }
 0x31d   : > { %s1567_s3 = scalar_lea.sflag [#allocation7], %s1681_s26  ;;  %p1102_p13 = scmp.ne.s32.totalorder %s1558_s24, %s1101_s23 }
 0x31e   : > { %s1243_s5 = smov [#allocation10]  }
 0x31f   : > { %p1682_p2 = scmp.ne.s32.totalorder %s1679_s7, 0  ;;  %s1105_s11 = sshll.u32 %s1243_s5, 4  ;;  %s1106_s11 = int_to_ptr.vmem [resolvable:$false] %s1105_s11 }
 0x320   : > { %s1107_s12 = scalar_lea.vmem %s1106_s11, 512  ;;  %p1108_p12 = scmp.lt.s32.totalorder %s1558_s24, %s1106_s11 }
 0x321   : > { %s1563_s8 = scalar_lea.hbm %s1680_s28, %s826_s20  ;;  %p1103_p4 = pnand %p1102_p13, %p1682_p2 }
 0x322   : > { %p1109_p0 = scmp.lt.s32.totalorder %s1107_s12, %s1101_s23 }
 0x323   : > { %p1104_p6 = pneg %p1103_p4 }
 0x324   : > { %p1110_p10 = por %p1109_p0, %p1108_p12 }
 0x326   : > { %p1111_p3 = pnand %p1110_p10, %p1104_p6 }
 0x328   : > { %1114 = shalt.err (!%p1111_p3)
}
 0x329   : > { %s1115_s16 = scalar_lea.hbm %s1563_s8, 256  ;;  %s1119_s19 = scalar_lea.hbm %s1680_s28, 2048 }
 0x32a   : > { %p1116_p9 = scmp.ne.s32.totalorder %s1563_s8, %s1115_s16  ;;  %p1120_p11 = scmp.lt.u32.totalorder %s1563_s8, %s1680_s28 }
 0x32b   : > { %p1121_p1 = scmp.lt.u32.totalorder %s1119_s19, %s1115_s16  ;;  %p1123_p13 = scmp.lt.u32.totalorder %s1115_s16, %s1563_s8 }
 0x32c   : > { %p1117_p7 = pnand %p1116_p9, %p1682_p2 }
 0x32d   : > { %p1122_p5 = por %p1121_p1, %p1120_p11 }
 0x32e   : > { %p1118_p8 = pneg %p1117_p7 }
 0x32f   : > { %p1124_p4 = por %p1123_p13, %p1122_p5 }
 0x331   : > { %p1125_p6 = pnand %p1124_p4, %p1118_p8 }
 0x333   : > { %1128 = shalt.err (!%p1125_p6)
}
 0x334   : > { %s1244_s15 = smov 128   ;;  %s1245_s29 = smov 256  }
 0x335   : > { %s1246_s26 = smov 8  }
 0x336   : > { %894 = dma.vmem_to_hbm [thread:$0]  (%p1682_p2), %s1558_s24, 256, %s1563_s8, %s1567_s3, %s1244_s15, %s1245_s29, %s1246_s26  }
 0x337 PF: > { %s1683_s23 = sld [smem:[#allocation16_spill]]  ;;  %s1684_s5 = sld [smem:[#allocation15_spill]] }
 0x338   : > { %s1685_s11 = sld [smem:[#allocation18_spill]] }
 0x33d   : > { %p911_p12 = scmp.ge.s32.totalorder %s1683_s23, 2  ;;  %s669_s12 = sand.u32 1, %s1684_s5  }
 0x33e   : > { %p1686_p0 = scmp.ne.s32.totalorder %s1685_s11, 0  ;;  %s670_s16 = scalar_lea.sflag [#allocation7], %s669_s12 }
 0x340   : > { %p905_p10 = pnand %p911_p12, %p1686_p0 }
 0x342   : > { %1184 = dma.done.wait (!%p905_p10), %s670_s16, 256  }
 0x343   : > { %1186 = vsyncadd (!%p905_p10), %s670_s16, 4294967040  ;;  %s30_s15 = sadd.s32 1, %s1683_s23   ;;  %s1687_s7 = sld [smem:[#allocation19_spill]] }
 0x344   : > { %p27_p3 = scmp.ge.s32.totalorder %s30_s15, 10   ;;  %s1688_s29 = smov %s1193_s0 }
 0x345   : > { %s1689_s0 = smov %s1197_s30  ;;  %s1690_s30 = smov %s1480_s27 }
 0x346   : > { %s1691_s8 = smov %s1205_s9  ;;  %s1692_s9 = smov %s1209_s10 }
 0x347   : > { %s1693_s10 = smov %s1431_s18  ;;  %s1694_s11 = smov %s1221_s13 }
 0x348   : > { %s1695_s12 = smov %s1225_s14  ;;  %s1697_s14 = smov %s1703_s17 }
 0x349   : > { %s1696_s13 = smov %s1687_s7  ;;  %29 = sbr.rel (!%p27_p3) target bundleno = 26 (0x1a), region = 123 }
 0x350   :  { %675 = vsyncpa [#allocation6], 1 }
 0x351   :  { %677 = vsyncpa [#allocation6 + $0x1], 1 }
 0x352   :  { %678 = vsyncpa [#allocation9], 1 }
 0x353   :  { %680 = vsyncpa [#allocation9 + $0x1], 1 }
 0x354   :  { %681 = vsyncpa [#allocation7], 1 }
 0x355   :  { %683 = vsyncpa [#allocation7 + $0x1], 1 }

</bundles_post_ra>
